<compile_context>
chip_gen: v7x
topology: tpu7x:2x2x1
jax: 0.10.0
libtpu: 0.0.40
codegen_flags: <defaults>
</compile_context>

<pallas_src>
import math

import jax
import jax.numpy as jnp
from jax.experimental import pallas as pl
from jax.experimental.pallas import tpu as pltpu


# ----------------------------------------------------------------------------
# Config
# ----------------------------------------------------------------------------
VOCAB = 64
TYPE_VOCAB = 2
MAX_POS = 16
HIDDEN = 32
N_LAYERS = 2
N_HEADS = 2
HEAD_DIM = HIDDEN // N_HEADS
INTERMEDIATE = 64
N_CLASSES = 6
HEAD_PAD = 128   # classifier head padded to a full lane width
LANES = 128

# Row layout of the packed small-parameter block ([SP_N_ROWS, 128] f32).
SP_EMB_LN_G = 0
SP_EMB_LN_B = 1
SP_POOL_B = 2
SP_OUT_B = 3
SP_LAYER_BASE = 4
(SP_BQ, SP_BK, SP_BV, SP_BO, SP_LN1_G, SP_LN1_B,
 SP_BI, SP_BO2, SP_LN2_G, SP_LN2_B) = range(10)
SP_ROWS_PER_LAYER = 10
SP_N_ROWS = SP_LAYER_BASE + N_LAYERS * SP_ROWS_PER_LAYER   # 24 (multiple of 8)


# ----------------------------------------------------------------------------
# In-kernel helpers
# ----------------------------------------------------------------------------
def _layernorm(x, g, b):
    """Row-wise LayerNorm over last axis, f32 statistics. x:[M,H] g,b:[1,H]."""
    mean = jnp.mean(x, axis=-1, keepdims=True)
    var = jnp.mean(jnp.square(x - mean), axis=-1, keepdims=True)
    return (x - mean) * jax.lax.rsqrt(var + 1e-12) * g + b


def _gelu(x):
    # tanh approximation of GELU (EUP-friendly).
    # TODO(synk): HF BERT default is the exact erf GELU; tanh approx differs slightly.
    return 0.5 * x * (1.0 + jnp.tanh(0.7978845608028654 * (x + 0.044715 * x * x * x)))


# ----------------------------------------------------------------------------
# Fused kernel: whole model, whole batch, one invocation, all activations in VMEM
# ----------------------------------------------------------------------------
def fused_bert_kernel(ids_ref, mask_ref, pos_type_ref, sp_ref,
                      word_emb_ref, wq_ref, wk_ref, wv_ref, woh_ref,
                      wi_ref, wo2_ref, pool_w_ref, out_w_ref,
                      o_ref):
    bs = ids_ref.shape[0]                                       # B*S (static)

    # ---- embeddings: one-hot gather on the MXU (no wrapper-side gather) ----
    ids = ids_ref[...]                                          # [BS, 1] int32
    vocab_iota = jax.lax.broadcasted_iota(jnp.int32, (bs, VOCAB), 1)
    onehot = (vocab_iota == ids).astype(jnp.bfloat16)           # [BS, VOCAB]
    h = jnp.dot(onehot, word_emb_ref[...],
                preferred_element_type=jnp.float32)             # [BS, H] f32
    h = h + pos_type_ref[...]                                   # + pos + token-type emb

    sp = sp_ref[...]                                            # [24, 128] packed biases/LN

    def srow(i, width=HIDDEN):
        return sp[i:i + 1, :width]                              # [1, width] static slice

    h = _layernorm(h, srow(SP_EMB_LN_G), srow(SP_EMB_LN_B))     # embedding LayerNorm

    add_mask = mask_ref[...]                                    # [BS, BS], hoisted once

    for l in range(N_LAYERS):                                   # static unroll (2 layers)
        base = SP_LAYER_BASE + l * SP_ROWS_PER_LAYER
        h_bf = h.astype(jnp.bfloat16)

        # ---- self-attention: per-head weight slabs, no lane slicing / concat ----
        attn = srow(base + SP_BO)                               # start from output bias [1, H]
        for hh in range(N_HEADS):                               # static unroll (2 heads)
            w_idx = l * N_HEADS + hh
            c0, c1 = hh * HEAD_DIM, (hh + 1) * HEAD_DIM
            q = jnp.dot(h_bf, wq_ref[w_idx],
                        preferred_element_type=jnp.float32) + srow(base + SP_BQ)[:, c0:c1]
            k = jnp.dot(h_bf, wk_ref[w_idx],
                        preferred_element_type=jnp.float32) + srow(base + SP_BK)[:, c0:c1]
            v = jnp.dot(h_bf, wv_ref[w_idx],
                        preferred_element_type=jnp.float32) + srow(base + SP_BV)[:, c0:c1]
            # scores: contract last dims (no explicit transpose); 1/sqrt(Dh) folded into Wq.
            s = jax.lax.dot_general(q.astype(jnp.bfloat16), k.astype(jnp.bfloat16),
                                    (((1,), (1,)), ((), ())),
                                    preferred_element_type=jnp.float32) + add_mask
            m = jnp.max(s, axis=-1, keepdims=True)
            p = jnp.exp(s - m)
            p = p * pl.reciprocal(jnp.sum(p, axis=-1, keepdims=True), approx=True)
            ctx = jnp.dot(p.astype(jnp.bfloat16), v.astype(jnp.bfloat16),
                          preferred_element_type=jnp.float32)   # [BS, Dh]
            # per-head slab of the output projection; sum over heads == ctx_full @ Wo
            attn = attn + jnp.dot(ctx.astype(jnp.bfloat16), woh_ref[w_idx],
                                  preferred_element_type=jnp.float32)
        h = _layernorm(h + attn, srow(base + SP_LN1_G), srow(base + SP_LN1_B))

        # ---- feed-forward ----
        h_bf = h.astype(jnp.bfloat16)
        ffn = _gelu(jnp.dot(h_bf, wi_ref[l], preferred_element_type=jnp.float32)
                    + srow(base + SP_BI, INTERMEDIATE))
        ffn = jnp.dot(ffn.astype(jnp.bfloat16), wo2_ref[l],
                      preferred_element_type=jnp.float32) + srow(base + SP_BO2)
        h = _layernorm(h + ffn, srow(base + SP_LN2_G), srow(base + SP_LN2_B))

    # ---- pooler + classifier on all rows ([CLS] rows selected in the wrapper) ----
    pooled = jnp.tanh(jnp.dot(h.astype(jnp.bfloat16), pool_w_ref[...],
                              preferred_element_type=jnp.float32) + srow(SP_POOL_B))
    # Dropout(0.3): identity at inference (eval mode).
    logits = jnp.dot(pooled.astype(jnp.bfloat16), out_w_ref[...],
                     preferred_element_type=jnp.float32) + sp[SP_OUT_B:SP_OUT_B + 1, :]
    o_ref[...] = logits                                         # [BS, 128] lane-dense store


# ----------------------------------------------------------------------------
# Parameter init (fused / stacked / bf16 layout, deterministic)
# ----------------------------------------------------------------------------
def init_params(key):
    def nrm(k, shape, scale=0.02):
        return scale * jax.random.normal(k, shape, dtype=jnp.float32)

    keys = iter(jax.random.split(key, 64))
    inv_sqrt_dh = 1.0 / math.sqrt(HEAD_DIM)

    p = {
        "word_emb": nrm(next(keys), (VOCAB, HIDDEN)).astype(jnp.bfloat16),
        "pos_emb": nrm(next(keys), (MAX_POS, HIDDEN)),    # used only in the wrapper
        "type_emb": nrm(next(keys), (TYPE_VOCAB, HIDDEN)),
        "pool_w": nrm(next(keys), (HIDDEN, HIDDEN)).astype(jnp.bfloat16),
    }

    # Classifier head padded to 128 lanes for a lane-dense output store.
    out_w = nrm(next(keys), (HIDDEN, N_CLASSES))
    p["out_w"] = (jnp.zeros((HIDDEN, HEAD_PAD), jnp.float32)
                  .at[:, :N_CLASSES].set(out_w).astype(jnp.bfloat16))

    # Per-(layer, head) attention weight slabs, layer-major stacking (bf16).
    wq, wk, wv, woh, wi, wo2 = [], [], [], [], [], []
    for _ in range(N_LAYERS):
        Wq = nrm(next(keys), (HIDDEN, HIDDEN)) * inv_sqrt_dh    # 1/sqrt(Dh) folded into Q
        Wk = nrm(next(keys), (HIDDEN, HIDDEN))
        Wv = nrm(next(keys), (HIDDEN, HIDDEN))
        Wo = nrm(next(keys), (HIDDEN, HIDDEN))
        for hh in range(N_HEADS):
            c0, c1 = hh * HEAD_DIM, (hh + 1) * HEAD_DIM
            wq.append(Wq[:, c0:c1])          # [H, Dh]
            wk.append(Wk[:, c0:c1])
            wv.append(Wv[:, c0:c1])
            woh.append(Wo[c0:c1, :])         # [Dh, H]  (sum over heads == ctx @ Wo)
        wi.append(nrm(next(keys), (HIDDEN, INTERMEDIATE)))
        wo2.append(nrm(next(keys), (INTERMEDIATE, HIDDEN)))
    p["wq"] = jnp.stack(wq).astype(jnp.bfloat16)     # [L*NH, H, Dh]
    p["wk"] = jnp.stack(wk).astype(jnp.bfloat16)
    p["wv"] = jnp.stack(wv).astype(jnp.bfloat16)
    p["woh"] = jnp.stack(woh).astype(jnp.bfloat16)   # [L*NH, Dh, H]
    p["wi"] = jnp.stack(wi).astype(jnp.bfloat16)     # [L, H, I]
    p["wo2"] = jnp.stack(wo2).astype(jnp.bfloat16)   # [L, I, H]

    # All tiny biases / LayerNorm affines packed into ONE [24, 128] f32 block.
    # (Biases start at zero here; a nonzero Q bias would also need the
    #  1/sqrt(head_dim) pre-scaling since the scale is folded into Wq.)
    sp = jnp.zeros((SP_N_ROWS, LANES), jnp.float32)
    sp = sp.at[SP_EMB_LN_G, :HIDDEN].set(1.0)
    for l in range(N_LAYERS):
        base = SP_LAYER_BASE + l * SP_ROWS_PER_LAYER
        sp = sp.at[base + SP_LN1_G, :HIDDEN].set(1.0)
        sp = sp.at[base + SP_LN2_G, :HIDDEN].set(1.0)
    p["small"] = sp
    return p


# ----------------------------------------------------------------------------
# Forward pass: tiny wrapper prep, then ONE fused pallas_call (single grid step)
# ----------------------------------------------------------------------------
def emotion_classifier_forward(params, input_ids, attention_mask):
    B, S = input_ids.shape
    BS = B * S

    ids = input_ids.reshape(BS, 1).astype(jnp.int32)            # [BS, 1] for in-kernel gather

    # Position + token-type embedding contribution (token_type_ids == 0);
    # input-independent, a couple of tiny fused XLA ops under jit.
    pos_type = (jnp.tile(params["pos_emb"][:S], (B, 1))
                + params["type_emb"][0][None, :]).astype(jnp.float32)   # [BS, H]

    # Block-diagonal additive attention mask over the flattened [B*S] token axis:
    # queries may only attend to non-padding keys of the same batch element.
    bidx = jnp.arange(BS, dtype=jnp.int32) // S
    same = bidx[:, None] == bidx[None, :]
    key_ok = attention_mask.reshape(BS).astype(jnp.float32) > 0.5
    add_mask = jnp.where(same & key_ok[None, :], 0.0, -1e9).astype(jnp.float32)  # [BS, BS]

    inputs = (ids, add_mask, pos_type, params["small"],
              params["word_emb"], params["wq"], params["wk"], params["wv"],
              params["woh"], params["wi"], params["wo2"],
              params["pool_w"], params["out_w"])

    def full_spec(shape):
        nd = len(shape)
        return pl.BlockSpec(shape, lambda i, _nd=nd: (0,) * _nd)

    # TODO(synk): on v7x, splitting into grid=(2,) "parallel" steps (B/2 rows each)
    # would engage both TensorCores; single-step is optimal for v5e/v6e.
    out = pl.pallas_call(
        fused_bert_kernel,
        out_shape=jax.ShapeDtypeStruct((BS, HEAD_PAD), jnp.float32),
        grid=(1,),
        in_specs=[full_spec(a.shape) for a in inputs],
        out_specs=full_spec((BS, HEAD_PAD)),
        compiler_params=pltpu.CompilerParams(dimension_semantics=("arbitrary",)),
        cost_estimate=pl.CostEstimate(flops=1_000_000, transcendentals=5_000,
                                      bytes_accessed=100_000),
    )(*inputs)

    # [CLS] rows are at positions b*S along the flattened token axis.
    return out[::S, :N_CLASSES]                                  # [B, n_classes]


if __name__ == "__main__":
    key = jax.random.PRNGKey(0)
    k_param, k_ids = jax.random.split(key)

    B, S = 2, 8
    params = init_params(k_param)
    input_ids = jax.random.randint(k_ids, (B, S), 0, VOCAB, dtype=jnp.int32)
    attention_mask = jnp.ones((B, S), dtype=jnp.int32)
    # make the mask non-trivial: last 2 tokens of batch 1 are padding
    attention_mask = attention_mask.at[1, -2:].set(0)

    forward = jax.jit(emotion_classifier_forward)
    logits = jax.block_until_ready(forward(params, input_ids, attention_mask))
    assert logits.shape == (B, N_CLASSES)
    assert bool(jnp.all(jnp.isfinite(logits)))
    print("KERNEL_OK")
</pallas_src>

<mosaic_0001>
module attributes {stable_mosaic.version = 11 : i64} {
  func.func @fused_bert_kernel(%arg0: i32, %arg1: memref<16x1xi32, #tpu.memory_space<vmem>>, %arg2: memref<16x16xf32, #tpu.memory_space<vmem>>, %arg3: memref<16x32xf32, #tpu.memory_space<vmem>>, %arg4: memref<24x128xf32, #tpu.memory_space<vmem>>, %arg5: memref<64x32xbf16, #tpu.memory_space<vmem>>, %arg6: memref<4x32x16xbf16, #tpu.memory_space<vmem>>, %arg7: memref<4x32x16xbf16, #tpu.memory_space<vmem>>, %arg8: memref<4x32x16xbf16, #tpu.memory_space<vmem>>, %arg9: memref<4x16x32xbf16, #tpu.memory_space<vmem>>, %arg10: memref<2x32x64xbf16, #tpu.memory_space<vmem>>, %arg11: memref<2x64x32xbf16, #tpu.memory_space<vmem>>, %arg12: memref<32x32xbf16, #tpu.memory_space<vmem>>, %arg13: memref<32x128xbf16, #tpu.memory_space<vmem>>, %arg14: memref<16x128xf32, #tpu.memory_space<vmem>>) attributes {dimension_semantics = [#tpu.dimension_semantics<arbitrary>], iteration_bounds = array<i64: 1>, scalar_prefetch = 0 : i64, scratch_operands = 0 : i64, tpu.core_type = #tpu.core_type<tc>, window_params = [{pipeline_mode = #tpu.pipeline_mode<synchronous>, transform_indices = @transform_0, window_bounds = array<i64: 16, 1>}, {pipeline_mode = #tpu.pipeline_mode<synchronous>, transform_indices = @transform_1, window_bounds = array<i64: 16, 16>}, {pipeline_mode = #tpu.pipeline_mode<synchronous>, transform_indices = @transform_2, window_bounds = array<i64: 16, 32>}, {pipeline_mode = #tpu.pipeline_mode<synchronous>, transform_indices = @transform_3, window_bounds = array<i64: 24, 128>}, {pipeline_mode = #tpu.pipeline_mode<synchronous>, transform_indices = @transform_4, window_bounds = array<i64: 64, 32>}, {pipeline_mode = #tpu.pipeline_mode<synchronous>, transform_indices = @transform_5, window_bounds = array<i64: 4, 32, 16>}, {pipeline_mode = #tpu.pipeline_mode<synchronous>, transform_indices = @transform_6, window_bounds = array<i64: 4, 32, 16>}, {pipeline_mode = #tpu.pipeline_mode<synchronous>, transform_indices = @transform_7, window_bounds = array<i64: 4, 32, 16>}, {pipeline_mode = #tpu.pipeline_mode<synchronous>, transform_indices = @transform_8, window_bounds = array<i64: 4, 16, 32>}, {pipeline_mode = #tpu.pipeline_mode<synchronous>, transform_indices = @transform_9, window_bounds = array<i64: 2, 32, 64>}, {pipeline_mode = #tpu.pipeline_mode<synchronous>, transform_indices = @transform_10, window_bounds = array<i64: 2, 64, 32>}, {pipeline_mode = #tpu.pipeline_mode<synchronous>, transform_indices = @transform_11, window_bounds = array<i64: 32, 32>}, {pipeline_mode = #tpu.pipeline_mode<synchronous>, transform_indices = @transform_12, window_bounds = array<i64: 32, 128>}, {pipeline_mode = #tpu.pipeline_mode<synchronous>, transform_indices = @transform_13, window_bounds = array<i64: 16, 128>}]} {
    %c0 = arith.constant 0 : index
    %c0_0 = arith.constant 0 : index
    %0 = vector.load %arg1[%c0, %c0_0] : memref<16x1xi32, #tpu.memory_space<vmem>>, vector<16x1xi32>
    %1 = tpu.iota {dimensions = array<i32: 1>} : vector<16x64xi32>
    %2 = vector.broadcast %0 : vector<16x1xi32> to vector<16x64xi32>
    %3 = arith.cmpi eq, %1, %2 : vector<16x64xi32>
    %4 = arith.extui %3 : vector<16x64xi1> to vector<16x64xi32>
    %5 = arith.sitofp %4 : vector<16x64xi32> to vector<16x64xf32>
    %6 = arith.truncf %5 : vector<16x64xf32> to vector<16x64xbf16>
    %c0_1 = arith.constant 0 : index
    %c0_2 = arith.constant 0 : index
    %7 = vector.load %arg5[%c0_1, %c0_2] : memref<64x32xbf16, #tpu.memory_space<vmem>>, vector<64x32xbf16>
    %cst = arith.constant dense<0.000000e+00> : vector<16x32xf32>
    %8 = tpu.matmul %6, %7, %cst {dimension_numbers = #tpu.dot_dimension_numbers<[1], [0], [0], [1], [0, 0, 1, 1], [], []>} : vector<16x64xbf16>, vector<64x32xbf16>, vector<16x32xf32> -> vector<16x32xf32>
    %c0_3 = arith.constant 0 : index
    %c0_4 = arith.constant 0 : index
    %9 = vector.load %arg3[%c0_3, %c0_4] : memref<16x32xf32, #tpu.memory_space<vmem>>, vector<16x32xf32>
    %10 = arith.addf %8, %9 : vector<16x32xf32>
    %c0_5 = arith.constant 0 : index
    %c0_6 = arith.constant 0 : index
    %11 = vector.load %arg4[%c0_5, %c0_6] : memref<24x128xf32, #tpu.memory_space<vmem>>, vector<24x128xf32>
    %12 = vector.extract_strided_slice %11 {offsets = [0, 0], sizes = [1, 32], strides = [1, 1]} : vector<24x128xf32> to vector<1x32xf32>
    %13 = vector.extract_strided_slice %11 {offsets = [1, 0], sizes = [1, 32], strides = [1, 1]} : vector<24x128xf32> to vector<1x32xf32>
    %cst_7 = arith.constant dense<0.000000e+00> : vector<16xf32>
    %14 = vector.multi_reduction <add>, %10, %cst_7 [1] : vector<16x32xf32> to vector<16xf32>
    %15 = vector.shape_cast %14 : vector<16xf32> to vector<16x1xf32>
    %cst_8 = arith.constant 3.200000e+01 : f32
    %16 = vector.broadcast %cst_8 : f32 to vector<16x1xf32>
    %17 = arith.divf %15, %16 : vector<16x1xf32>
    %18 = vector.broadcast %17 : vector<16x1xf32> to vector<16x32xf32>
    %19 = arith.subf %10, %18 : vector<16x32xf32>
    %20 = arith.mulf %19, %19 : vector<16x32xf32>
    %cst_9 = arith.constant dense<0.000000e+00> : vector<16xf32>
    %21 = vector.multi_reduction <add>, %20, %cst_9 [1] : vector<16x32xf32> to vector<16xf32>
    %22 = vector.shape_cast %21 : vector<16xf32> to vector<16x1xf32>
    %cst_10 = arith.constant 3.200000e+01 : f32
    %23 = vector.broadcast %cst_10 : f32 to vector<16x1xf32>
    %24 = arith.divf %22, %23 : vector<16x1xf32>
    %25 = vector.broadcast %17 : vector<16x1xf32> to vector<16x32xf32>
    %26 = arith.subf %10, %25 : vector<16x32xf32>
    %cst_11 = arith.constant 9.99999996E-13 : f32
    %27 = vector.broadcast %cst_11 : f32 to vector<16x1xf32>
    %28 = arith.addf %24, %27 : vector<16x1xf32>
    %29 = math.rsqrt %28 : vector<16x1xf32>
    %30 = vector.broadcast %29 : vector<16x1xf32> to vector<16x32xf32>
    %31 = arith.mulf %26, %30 : vector<16x32xf32>
    %32 = vector.broadcast %12 : vector<1x32xf32> to vector<16x32xf32>
    %33 = arith.mulf %31, %32 : vector<16x32xf32>
    %34 = vector.broadcast %13 : vector<1x32xf32> to vector<16x32xf32>
    %35 = arith.addf %33, %34 : vector<16x32xf32>
    %c0_12 = arith.constant 0 : index
    %c0_13 = arith.constant 0 : index
    %36 = vector.load %arg2[%c0_12, %c0_13] : memref<16x16xf32, #tpu.memory_space<vmem>>, vector<16x16xf32>
    %37 = arith.truncf %35 : vector<16x32xf32> to vector<16x32xbf16>
    %38 = vector.extract_strided_slice %11 {offsets = [7, 0], sizes = [1, 32], strides = [1, 1]} : vector<24x128xf32> to vector<1x32xf32>
    %c0_14 = arith.constant 0 : index
    %c0_15 = arith.constant 0 : index
    %c0_16 = arith.constant 0 : index
    %39 = vector.load %arg6[%c0_14, %c0_15, %c0_16] : memref<4x32x16xbf16, #tpu.memory_space<vmem>>, vector<1x32x16xbf16>
    %40 = vector.shape_cast %39 : vector<1x32x16xbf16> to vector<32x16xbf16>
    %cst_17 = arith.constant dense<0.000000e+00> : vector<16x16xf32>
    %41 = tpu.matmul %37, %40, %cst_17 {dimension_numbers = #tpu.dot_dimension_numbers<[1], [0], [0], [1], [0, 0, 1, 1], [], []>} : vector<16x32xbf16>, vector<32x16xbf16>, vector<16x16xf32> -> vector<16x16xf32>
    %42 = vector.extract_strided_slice %11 {offsets = [4, 0], sizes = [1, 32], strides = [1, 1]} : vector<24x128xf32> to vector<1x32xf32>
    %43 = vector.extract_strided_slice %42 {offsets = [0, 0], sizes = [1, 16], strides = [1, 1]} : vector<1x32xf32> to vector<1x16xf32>
    %44 = vector.broadcast %43 : vector<1x16xf32> to vector<16x16xf32>
    %45 = arith.addf %41, %44 : vector<16x16xf32>
    %c0_18 = arith.constant 0 : index
    %c0_19 = arith.constant 0 : index
    %c0_20 = arith.constant 0 : index
    %46 = vector.load %arg7[%c0_18, %c0_19, %c0_20] : memref<4x32x16xbf16, #tpu.memory_space<vmem>>, vector<1x32x16xbf16>
    %47 = vector.shape_cast %46 : vector<1x32x16xbf16> to vector<32x16xbf16>
    %cst_21 = arith.constant dense<0.000000e+00> : vector<16x16xf32>
    %48 = tpu.matmul %37, %47, %cst_21 {dimension_numbers = #tpu.dot_dimension_numbers<[1], [0], [0], [1], [0, 0, 1, 1], [], []>} : vector<16x32xbf16>, vector<32x16xbf16>, vector<16x16xf32> -> vector<16x16xf32>
    %49 = vector.extract_strided_slice %11 {offsets = [5, 0], sizes = [1, 32], strides = [1, 1]} : vector<24x128xf32> to vector<1x32xf32>
    %50 = vector.extract_strided_slice %49 {offsets = [0, 0], sizes = [1, 16], strides = [1, 1]} : vector<1x32xf32> to vector<1x16xf32>
    %51 = vector.broadcast %50 : vector<1x16xf32> to vector<16x16xf32>
    %52 = arith.addf %48, %51 : vector<16x16xf32>
    %c0_22 = arith.constant 0 : index
    %c0_23 = arith.constant 0 : index
    %c0_24 = arith.constant 0 : index
    %53 = vector.load %arg8[%c0_22, %c0_23, %c0_24] : memref<4x32x16xbf16, #tpu.memory_space<vmem>>, vector<1x32x16xbf16>
    %54 = vector.shape_cast %53 : vector<1x32x16xbf16> to vector<32x16xbf16>
    %cst_25 = arith.constant dense<0.000000e+00> : vector<16x16xf32>
    %55 = tpu.matmul %37, %54, %cst_25 {dimension_numbers = #tpu.dot_dimension_numbers<[1], [0], [0], [1], [0, 0, 1, 1], [], []>} : vector<16x32xbf16>, vector<32x16xbf16>, vector<16x16xf32> -> vector<16x16xf32>
    %56 = vector.extract_strided_slice %11 {offsets = [6, 0], sizes = [1, 32], strides = [1, 1]} : vector<24x128xf32> to vector<1x32xf32>
    %57 = vector.extract_strided_slice %56 {offsets = [0, 0], sizes = [1, 16], strides = [1, 1]} : vector<1x32xf32> to vector<1x16xf32>
    %58 = vector.broadcast %57 : vector<1x16xf32> to vector<16x16xf32>
    %59 = arith.addf %55, %58 : vector<16x16xf32>
    %60 = arith.truncf %45 : vector<16x16xf32> to vector<16x16xbf16>
    %61 = arith.truncf %52 : vector<16x16xf32> to vector<16x16xbf16>
    %cst_26 = arith.constant dense<0.000000e+00> : vector<16x16xf32>
    %62 = tpu.matmul %60, %61, %cst_26 {dimension_numbers = #tpu.dot_dimension_numbers<[1], [1], [0], [0], [0, 0, 1, 0], [], []>} : vector<16x16xbf16>, vector<16x16xbf16>, vector<16x16xf32> -> vector<16x16xf32>
    %63 = arith.addf %62, %36 : vector<16x16xf32>
    %cst_27 = arith.constant dense<0xFF800000> : vector<16xf32>
    %64 = vector.multi_reduction <maximumf>, %63, %cst_27 [1] : vector<16x16xf32> to vector<16xf32>
    %65 = vector.shape_cast %64 : vector<16xf32> to vector<16x1xf32>
    %66 = vector.broadcast %65 : vector<16x1xf32> to vector<16x16xf32>
    %67 = arith.subf %63, %66 : vector<16x16xf32>
    %68 = math.exp %67 : vector<16x16xf32>
    %cst_28 = arith.constant dense<0.000000e+00> : vector<16xf32>
    %69 = vector.multi_reduction <add>, %68, %cst_28 [1] : vector<16x16xf32> to vector<16xf32>
    %70 = vector.shape_cast %69 : vector<16xf32> to vector<16x1xf32>
    %71 = tpu.reciprocal %70 {approx = true} : vector<16x1xf32> -> vector<16x1xf32>
    %72 = vector.broadcast %71 : vector<16x1xf32> to vector<16x16xf32>
    %73 = arith.mulf %68, %72 : vector<16x16xf32>
    %74 = arith.truncf %73 : vector<16x16xf32> to vector<16x16xbf16>
    %75 = arith.truncf %59 : vector<16x16xf32> to vector<16x16xbf16>
    %cst_29 = arith.constant dense<0.000000e+00> : vector<16x16xf32>
    %76 = tpu.matmul %74, %75, %cst_29 {dimension_numbers = #tpu.dot_dimension_numbers<[1], [0], [0], [1], [0, 0, 1, 1], [], []>} : vector<16x16xbf16>, vector<16x16xbf16>, vector<16x16xf32> -> vector<16x16xf32>
    %77 = arith.truncf %76 : vector<16x16xf32> to vector<16x16xbf16>
    %c0_30 = arith.constant 0 : index
    %c0_31 = arith.constant 0 : index
    %c0_32 = arith.constant 0 : index
    %78 = vector.load %arg9[%c0_30, %c0_31, %c0_32] : memref<4x16x32xbf16, #tpu.memory_space<vmem>>, vector<1x16x32xbf16>
    %79 = vector.shape_cast %78 : vector<1x16x32xbf16> to vector<16x32xbf16>
    %cst_33 = arith.constant dense<0.000000e+00> : vector<16x32xf32>
    %80 = tpu.matmul %77, %79, %cst_33 {dimension_numbers = #tpu.dot_dimension_numbers<[1], [0], [0], [1], [0, 0, 1, 1], [], []>} : vector<16x16xbf16>, vector<16x32xbf16>, vector<16x32xf32> -> vector<16x32xf32>
    %81 = vector.broadcast %38 : vector<1x32xf32> to vector<16x32xf32>
    %82 = arith.addf %81, %80 : vector<16x32xf32>
    %c1 = arith.constant 1 : index
    %c0_34 = arith.constant 0 : index
    %c0_35 = arith.constant 0 : index
    %83 = vector.load %arg6[%c1, %c0_34, %c0_35] : memref<4x32x16xbf16, #tpu.memory_space<vmem>>, vector<1x32x16xbf16>
    %84 = vector.shape_cast %83 : vector<1x32x16xbf16> to vector<32x16xbf16>
    %cst_36 = arith.constant dense<0.000000e+00> : vector<16x16xf32>
    %85 = tpu.matmul %37, %84, %cst_36 {dimension_numbers = #tpu.dot_dimension_numbers<[1], [0], [0], [1], [0, 0, 1, 1], [], []>} : vector<16x32xbf16>, vector<32x16xbf16>, vector<16x16xf32> -> vector<16x16xf32>
    %86 = vector.extract_strided_slice %11 {offsets = [4, 0], sizes = [1, 32], strides = [1, 1]} : vector<24x128xf32> to vector<1x32xf32>
    %87 = vector.extract_strided_slice %86 {offsets = [0, 16], sizes = [1, 16], strides = [1, 1]} : vector<1x32xf32> to vector<1x16xf32>
    %88 = vector.broadcast %87 : vector<1x16xf32> to vector<16x16xf32>
    %89 = arith.addf %85, %88 : vector<16x16xf32>
    %c1_37 = arith.constant 1 : index
    %c0_38 = arith.constant 0 : index
    %c0_39 = arith.constant 0 : index
    %90 = vector.load %arg7[%c1_37, %c0_38, %c0_39] : memref<4x32x16xbf16, #tpu.memory_space<vmem>>, vector<1x32x16xbf16>
    %91 = vector.shape_cast %90 : vector<1x32x16xbf16> to vector<32x16xbf16>
    %cst_40 = arith.constant dense<0.000000e+00> : vector<16x16xf32>
    %92 = tpu.matmul %37, %91, %cst_40 {dimension_numbers = #tpu.dot_dimension_numbers<[1], [0], [0], [1], [0, 0, 1, 1], [], []>} : vector<16x32xbf16>, vector<32x16xbf16>, vector<16x16xf32> -> vector<16x16xf32>
    %93 = vector.extract_strided_slice %11 {offsets = [5, 0], sizes = [1, 32], strides = [1, 1]} : vector<24x128xf32> to vector<1x32xf32>
    %94 = vector.extract_strided_slice %93 {offsets = [0, 16], sizes = [1, 16], strides = [1, 1]} : vector<1x32xf32> to vector<1x16xf32>
    %95 = vector.broadcast %94 : vector<1x16xf32> to vector<16x16xf32>
    %96 = arith.addf %92, %95 : vector<16x16xf32>
    %c1_41 = arith.constant 1 : index
    %c0_42 = arith.constant 0 : index
    %c0_43 = arith.constant 0 : index
    %97 = vector.load %arg8[%c1_41, %c0_42, %c0_43] : memref<4x32x16xbf16, #tpu.memory_space<vmem>>, vector<1x32x16xbf16>
    %98 = vector.shape_cast %97 : vector<1x32x16xbf16> to vector<32x16xbf16>
    %cst_44 = arith.constant dense<0.000000e+00> : vector<16x16xf32>
    %99 = tpu.matmul %37, %98, %cst_44 {dimension_numbers = #tpu.dot_dimension_numbers<[1], [0], [0], [1], [0, 0, 1, 1], [], []>} : vector<16x32xbf16>, vector<32x16xbf16>, vector<16x16xf32> -> vector<16x16xf32>
    %100 = vector.extract_strided_slice %11 {offsets = [6, 0], sizes = [1, 32], strides = [1, 1]} : vector<24x128xf32> to vector<1x32xf32>
    %101 = vector.extract_strided_slice %100 {offsets = [0, 16], sizes = [1, 16], strides = [1, 1]} : vector<1x32xf32> to vector<1x16xf32>
    %102 = vector.broadcast %101 : vector<1x16xf32> to vector<16x16xf32>
    %103 = arith.addf %99, %102 : vector<16x16xf32>
    %104 = arith.truncf %89 : vector<16x16xf32> to vector<16x16xbf16>
    %105 = arith.truncf %96 : vector<16x16xf32> to vector<16x16xbf16>
    %cst_45 = arith.constant dense<0.000000e+00> : vector<16x16xf32>
    %106 = tpu.matmul %104, %105, %cst_45 {dimension_numbers = #tpu.dot_dimension_numbers<[1], [1], [0], [0], [0, 0, 1, 0], [], []>} : vector<16x16xbf16>, vector<16x16xbf16>, vector<16x16xf32> -> vector<16x16xf32>
    %107 = arith.addf %106, %36 : vector<16x16xf32>
    %cst_46 = arith.constant dense<0xFF800000> : vector<16xf32>
    %108 = vector.multi_reduction <maximumf>, %107, %cst_46 [1] : vector<16x16xf32> to vector<16xf32>
    %109 = vector.shape_cast %108 : vector<16xf32> to vector<16x1xf32>
    %110 = vector.broadcast %109 : vector<16x1xf32> to vector<16x16xf32>
    %111 = arith.subf %107, %110 : vector<16x16xf32>
    %112 = math.exp %111 : vector<16x16xf32>
    %cst_47 = arith.constant dense<0.000000e+00> : vector<16xf32>
    %113 = vector.multi_reduction <add>, %112, %cst_47 [1] : vector<16x16xf32> to vector<16xf32>
    %114 = vector.shape_cast %113 : vector<16xf32> to vector<16x1xf32>
    %115 = tpu.reciprocal %114 {approx = true} : vector<16x1xf32> -> vector<16x1xf32>
    %116 = vector.broadcast %115 : vector<16x1xf32> to vector<16x16xf32>
    %117 = arith.mulf %112, %116 : vector<16x16xf32>
    %118 = arith.truncf %117 : vector<16x16xf32> to vector<16x16xbf16>
    %119 = arith.truncf %103 : vector<16x16xf32> to vector<16x16xbf16>
    %cst_48 = arith.constant dense<0.000000e+00> : vector<16x16xf32>
    %120 = tpu.matmul %118, %119, %cst_48 {dimension_numbers = #tpu.dot_dimension_numbers<[1], [0], [0], [1], [0, 0, 1, 1], [], []>} : vector<16x16xbf16>, vector<16x16xbf16>, vector<16x16xf32> -> vector<16x16xf32>
    %121 = arith.truncf %120 : vector<16x16xf32> to vector<16x16xbf16>
    %c1_49 = arith.constant 1 : index
    %c0_50 = arith.constant 0 : index
    %c0_51 = arith.constant 0 : index
    %122 = vector.load %arg9[%c1_49, %c0_50, %c0_51] : memref<4x16x32xbf16, #tpu.memory_space<vmem>>, vector<1x16x32xbf16>
    %123 = vector.shape_cast %122 : vector<1x16x32xbf16> to vector<16x32xbf16>
    %cst_52 = arith.constant dense<0.000000e+00> : vector<16x32xf32>
    %124 = tpu.matmul %121, %123, %cst_52 {dimension_numbers = #tpu.dot_dimension_numbers<[1], [0], [0], [1], [0, 0, 1, 1], [], []>} : vector<16x16xbf16>, vector<16x32xbf16>, vector<16x32xf32> -> vector<16x32xf32>
    %125 = arith.addf %82, %124 : vector<16x32xf32>
    %126 = arith.addf %35, %125 : vector<16x32xf32>
    %127 = vector.extract_strided_slice %11 {offsets = [8, 0], sizes = [1, 32], strides = [1, 1]} : vector<24x128xf32> to vector<1x32xf32>
    %128 = vector.extract_strided_slice %11 {offsets = [9, 0], sizes = [1, 32], strides = [1, 1]} : vector<24x128xf32> to vector<1x32xf32>
    %cst_53 = arith.constant dense<0.000000e+00> : vector<16xf32>
    %129 = vector.multi_reduction <add>, %126, %cst_53 [1] : vector<16x32xf32> to vector<16xf32>
    %130 = vector.shape_cast %129 : vector<16xf32> to vector<16x1xf32>
    %cst_54 = arith.constant 3.200000e+01 : f32
    %131 = vector.broadcast %cst_54 : f32 to vector<16x1xf32>
    %132 = arith.divf %130, %131 : vector<16x1xf32>
    %133 = vector.broadcast %132 : vector<16x1xf32> to vector<16x32xf32>
    %134 = arith.subf %126, %133 : vector<16x32xf32>
    %135 = arith.mulf %134, %134 : vector<16x32xf32>
    %cst_55 = arith.constant dense<0.000000e+00> : vector<16xf32>
    %136 = vector.multi_reduction <add>, %135, %cst_55 [1] : vector<16x32xf32> to vector<16xf32>
    %137 = vector.shape_cast %136 : vector<16xf32> to vector<16x1xf32>
    %cst_56 = arith.constant 3.200000e+01 : f32
    %138 = vector.broadcast %cst_56 : f32 to vector<16x1xf32>
    %139 = arith.divf %137, %138 : vector<16x1xf32>
    %140 = vector.broadcast %132 : vector<16x1xf32> to vector<16x32xf32>
    %141 = arith.subf %126, %140 : vector<16x32xf32>
    %cst_57 = arith.constant 9.99999996E-13 : f32
    %142 = vector.broadcast %cst_57 : f32 to vector<16x1xf32>
    %143 = arith.addf %139, %142 : vector<16x1xf32>
    %144 = math.rsqrt %143 : vector<16x1xf32>
    %145 = vector.broadcast %144 : vector<16x1xf32> to vector<16x32xf32>
    %146 = arith.mulf %141, %145 : vector<16x32xf32>
    %147 = vector.broadcast %127 : vector<1x32xf32> to vector<16x32xf32>
    %148 = arith.mulf %146, %147 : vector<16x32xf32>
    %149 = vector.broadcast %128 : vector<1x32xf32> to vector<16x32xf32>
    %150 = arith.addf %148, %149 : vector<16x32xf32>
    %151 = arith.truncf %150 : vector<16x32xf32> to vector<16x32xbf16>
    %c0_58 = arith.constant 0 : index
    %c0_59 = arith.constant 0 : index
    %c0_60 = arith.constant 0 : index
    %152 = vector.load %arg10[%c0_58, %c0_59, %c0_60] : memref<2x32x64xbf16, #tpu.memory_space<vmem>>, vector<1x32x64xbf16>
    %153 = vector.shape_cast %152 : vector<1x32x64xbf16> to vector<32x64xbf16>
    %cst_61 = arith.constant dense<0.000000e+00> : vector<16x64xf32>
    %154 = tpu.matmul %151, %153, %cst_61 {dimension_numbers = #tpu.dot_dimension_numbers<[1], [0], [0], [1], [0, 0, 1, 1], [], []>} : vector<16x32xbf16>, vector<32x64xbf16>, vector<16x64xf32> -> vector<16x64xf32>
    %155 = vector.extract_strided_slice %11 {offsets = [10, 0], sizes = [1, 64], strides = [1, 1]} : vector<24x128xf32> to vector<1x64xf32>
    %156 = vector.broadcast %155 : vector<1x64xf32> to vector<16x64xf32>
    %157 = arith.addf %154, %156 : vector<16x64xf32>
    %cst_62 = arith.constant 5.000000e-01 : f32
    %158 = vector.broadcast %cst_62 : f32 to vector<16x64xf32>
    %159 = arith.mulf %158, %157 : vector<16x64xf32>
    %cst_63 = arith.constant 4.471500e-02 : f32
    %160 = vector.broadcast %cst_63 : f32 to vector<16x64xf32>
    %161 = arith.mulf %160, %157 : vector<16x64xf32>
    %162 = arith.mulf %161, %157 : vector<16x64xf32>
    %163 = arith.mulf %162, %157 : vector<16x64xf32>
    %164 = arith.addf %157, %163 : vector<16x64xf32>
    %cst_64 = arith.constant 0.797884583 : f32
    %165 = vector.broadcast %cst_64 : f32 to vector<16x64xf32>
    %166 = arith.mulf %165, %164 : vector<16x64xf32>
    %167 = math.tanh %166 : vector<16x64xf32>
    %cst_65 = arith.constant 1.000000e+00 : f32
    %168 = vector.broadcast %cst_65 : f32 to vector<16x64xf32>
    %169 = arith.addf %168, %167 : vector<16x64xf32>
    %170 = arith.mulf %159, %169 : vector<16x64xf32>
    %171 = arith.truncf %170 : vector<16x64xf32> to vector<16x64xbf16>
    %c0_66 = arith.constant 0 : index
    %c0_67 = arith.constant 0 : index
    %c0_68 = arith.constant 0 : index
    %172 = vector.load %arg11[%c0_66, %c0_67, %c0_68] : memref<2x64x32xbf16, #tpu.memory_space<vmem>>, vector<1x64x32xbf16>
    %173 = vector.shape_cast %172 : vector<1x64x32xbf16> to vector<64x32xbf16>
    %cst_69 = arith.constant dense<0.000000e+00> : vector<16x32xf32>
    %174 = tpu.matmul %171, %173, %cst_69 {dimension_numbers = #tpu.dot_dimension_numbers<[1], [0], [0], [1], [0, 0, 1, 1], [], []>} : vector<16x64xbf16>, vector<64x32xbf16>, vector<16x32xf32> -> vector<16x32xf32>
    %175 = vector.extract_strided_slice %11 {offsets = [11, 0], sizes = [1, 32], strides = [1, 1]} : vector<24x128xf32> to vector<1x32xf32>
    %176 = vector.broadcast %175 : vector<1x32xf32> to vector<16x32xf32>
    %177 = arith.addf %174, %176 : vector<16x32xf32>
    %178 = arith.addf %150, %177 : vector<16x32xf32>
    %179 = vector.extract_strided_slice %11 {offsets = [12, 0], sizes = [1, 32], strides = [1, 1]} : vector<24x128xf32> to vector<1x32xf32>
    %180 = vector.extract_strided_slice %11 {offsets = [13, 0], sizes = [1, 32], strides = [1, 1]} : vector<24x128xf32> to vector<1x32xf32>
    %cst_70 = arith.constant dense<0.000000e+00> : vector<16xf32>
    %181 = vector.multi_reduction <add>, %178, %cst_70 [1] : vector<16x32xf32> to vector<16xf32>
    %182 = vector.shape_cast %181 : vector<16xf32> to vector<16x1xf32>
    %cst_71 = arith.constant 3.200000e+01 : f32
    %183 = vector.broadcast %cst_71 : f32 to vector<16x1xf32>
    %184 = arith.divf %182, %183 : vector<16x1xf32>
    %185 = vector.broadcast %184 : vector<16x1xf32> to vector<16x32xf32>
    %186 = arith.subf %178, %185 : vector<16x32xf32>
    %187 = arith.mulf %186, %186 : vector<16x32xf32>
    %cst_72 = arith.constant dense<0.000000e+00> : vector<16xf32>
    %188 = vector.multi_reduction <add>, %187, %cst_72 [1] : vector<16x32xf32> to vector<16xf32>
    %189 = vector.shape_cast %188 : vector<16xf32> to vector<16x1xf32>
    %cst_73 = arith.constant 3.200000e+01 : f32
    %190 = vector.broadcast %cst_73 : f32 to vector<16x1xf32>
    %191 = arith.divf %189, %190 : vector<16x1xf32>
    %192 = vector.broadcast %184 : vector<16x1xf32> to vector<16x32xf32>
    %193 = arith.subf %178, %192 : vector<16x32xf32>
    %cst_74 = arith.constant 9.99999996E-13 : f32
    %194 = vector.broadcast %cst_74 : f32 to vector<16x1xf32>
    %195 = arith.addf %191, %194 : vector<16x1xf32>
    %196 = math.rsqrt %195 : vector<16x1xf32>
    %197 = vector.broadcast %196 : vector<16x1xf32> to vector<16x32xf32>
    %198 = arith.mulf %193, %197 : vector<16x32xf32>
    %199 = vector.broadcast %179 : vector<1x32xf32> to vector<16x32xf32>
    %200 = arith.mulf %198, %199 : vector<16x32xf32>
    %201 = vector.broadcast %180 : vector<1x32xf32> to vector<16x32xf32>
    %202 = arith.addf %200, %201 : vector<16x32xf32>
    %203 = arith.truncf %202 : vector<16x32xf32> to vector<16x32xbf16>
    %204 = vector.extract_strided_slice %11 {offsets = [17, 0], sizes = [1, 32], strides = [1, 1]} : vector<24x128xf32> to vector<1x32xf32>
    %c2 = arith.constant 2 : index
    %c0_75 = arith.constant 0 : index
    %c0_76 = arith.constant 0 : index
    %205 = vector.load %arg6[%c2, %c0_75, %c0_76] : memref<4x32x16xbf16, #tpu.memory_space<vmem>>, vector<1x32x16xbf16>
    %206 = vector.shape_cast %205 : vector<1x32x16xbf16> to vector<32x16xbf16>
    %cst_77 = arith.constant dense<0.000000e+00> : vector<16x16xf32>
    %207 = tpu.matmul %203, %206, %cst_77 {dimension_numbers = #tpu.dot_dimension_numbers<[1], [0], [0], [1], [0, 0, 1, 1], [], []>} : vector<16x32xbf16>, vector<32x16xbf16>, vector<16x16xf32> -> vector<16x16xf32>
    %208 = vector.extract_strided_slice %11 {offsets = [14, 0], sizes = [1, 32], strides = [1, 1]} : vector<24x128xf32> to vector<1x32xf32>
    %209 = vector.extract_strided_slice %208 {offsets = [0, 0], sizes = [1, 16], strides = [1, 1]} : vector<1x32xf32> to vector<1x16xf32>
    %210 = vector.broadcast %209 : vector<1x16xf32> to vector<16x16xf32>
    %211 = arith.addf %207, %210 : vector<16x16xf32>
    %c2_78 = arith.constant 2 : index
    %c0_79 = arith.constant 0 : index
    %c0_80 = arith.constant 0 : index
    %212 = vector.load %arg7[%c2_78, %c0_79, %c0_80] : memref<4x32x16xbf16, #tpu.memory_space<vmem>>, vector<1x32x16xbf16>
    %213 = vector.shape_cast %212 : vector<1x32x16xbf16> to vector<32x16xbf16>
    %cst_81 = arith.constant dense<0.000000e+00> : vector<16x16xf32>
    %214 = tpu.matmul %203, %213, %cst_81 {dimension_numbers = #tpu.dot_dimension_numbers<[1], [0], [0], [1], [0, 0, 1, 1], [], []>} : vector<16x32xbf16>, vector<32x16xbf16>, vector<16x16xf32> -> vector<16x16xf32>
    %215 = vector.extract_strided_slice %11 {offsets = [15, 0], sizes = [1, 32], strides = [1, 1]} : vector<24x128xf32> to vector<1x32xf32>
    %216 = vector.extract_strided_slice %215 {offsets = [0, 0], sizes = [1, 16], strides = [1, 1]} : vector<1x32xf32> to vector<1x16xf32>
    %217 = vector.broadcast %216 : vector<1x16xf32> to vector<16x16xf32>
    %218 = arith.addf %214, %217 : vector<16x16xf32>
    %c2_82 = arith.constant 2 : index
    %c0_83 = arith.constant 0 : index
    %c0_84 = arith.constant 0 : index
    %219 = vector.load %arg8[%c2_82, %c0_83, %c0_84] : memref<4x32x16xbf16, #tpu.memory_space<vmem>>, vector<1x32x16xbf16>
    %220 = vector.shape_cast %219 : vector<1x32x16xbf16> to vector<32x16xbf16>
    %cst_85 = arith.constant dense<0.000000e+00> : vector<16x16xf32>
    %221 = tpu.matmul %203, %220, %cst_85 {dimension_numbers = #tpu.dot_dimension_numbers<[1], [0], [0], [1], [0, 0, 1, 1], [], []>} : vector<16x32xbf16>, vector<32x16xbf16>, vector<16x16xf32> -> vector<16x16xf32>
    %222 = vector.extract_strided_slice %11 {offsets = [16, 0], sizes = [1, 32], strides = [1, 1]} : vector<24x128xf32> to vector<1x32xf32>
    %223 = vector.extract_strided_slice %222 {offsets = [0, 0], sizes = [1, 16], strides = [1, 1]} : vector<1x32xf32> to vector<1x16xf32>
    %224 = vector.broadcast %223 : vector<1x16xf32> to vector<16x16xf32>
    %225 = arith.addf %221, %224 : vector<16x16xf32>
    %226 = arith.truncf %211 : vector<16x16xf32> to vector<16x16xbf16>
    %227 = arith.truncf %218 : vector<16x16xf32> to vector<16x16xbf16>
    %cst_86 = arith.constant dense<0.000000e+00> : vector<16x16xf32>
    %228 = tpu.matmul %226, %227, %cst_86 {dimension_numbers = #tpu.dot_dimension_numbers<[1], [1], [0], [0], [0, 0, 1, 0], [], []>} : vector<16x16xbf16>, vector<16x16xbf16>, vector<16x16xf32> -> vector<16x16xf32>
    %229 = arith.addf %228, %36 : vector<16x16xf32>
    %cst_87 = arith.constant dense<0xFF800000> : vector<16xf32>
    %230 = vector.multi_reduction <maximumf>, %229, %cst_87 [1] : vector<16x16xf32> to vector<16xf32>
    %231 = vector.shape_cast %230 : vector<16xf32> to vector<16x1xf32>
    %232 = vector.broadcast %231 : vector<16x1xf32> to vector<16x16xf32>
    %233 = arith.subf %229, %232 : vector<16x16xf32>
    %234 = math.exp %233 : vector<16x16xf32>
    %cst_88 = arith.constant dense<0.000000e+00> : vector<16xf32>
    %235 = vector.multi_reduction <add>, %234, %cst_88 [1] : vector<16x16xf32> to vector<16xf32>
    %236 = vector.shape_cast %235 : vector<16xf32> to vector<16x1xf32>
    %237 = tpu.reciprocal %236 {approx = true} : vector<16x1xf32> -> vector<16x1xf32>
    %238 = vector.broadcast %237 : vector<16x1xf32> to vector<16x16xf32>
    %239 = arith.mulf %234, %238 : vector<16x16xf32>
    %240 = arith.truncf %239 : vector<16x16xf32> to vector<16x16xbf16>
    %241 = arith.truncf %225 : vector<16x16xf32> to vector<16x16xbf16>
    %cst_89 = arith.constant dense<0.000000e+00> : vector<16x16xf32>
    %242 = tpu.matmul %240, %241, %cst_89 {dimension_numbers = #tpu.dot_dimension_numbers<[1], [0], [0], [1], [0, 0, 1, 1], [], []>} : vector<16x16xbf16>, vector<16x16xbf16>, vector<16x16xf32> -> vector<16x16xf32>
    %243 = arith.truncf %242 : vector<16x16xf32> to vector<16x16xbf16>
    %c2_90 = arith.constant 2 : index
    %c0_91 = arith.constant 0 : index
    %c0_92 = arith.constant 0 : index
    %244 = vector.load %arg9[%c2_90, %c0_91, %c0_92] : memref<4x16x32xbf16, #tpu.memory_space<vmem>>, vector<1x16x32xbf16>
    %245 = vector.shape_cast %244 : vector<1x16x32xbf16> to vector<16x32xbf16>
    %cst_93 = arith.constant dense<0.000000e+00> : vector<16x32xf32>
    %246 = tpu.matmul %243, %245, %cst_93 {dimension_numbers = #tpu.dot_dimension_numbers<[1], [0], [0], [1], [0, 0, 1, 1], [], []>} : vector<16x16xbf16>, vector<16x32xbf16>, vector<16x32xf32> -> vector<16x32xf32>
    %247 = vector.broadcast %204 : vector<1x32xf32> to vector<16x32xf32>
    %248 = arith.addf %247, %246 : vector<16x32xf32>
    %c3 = arith.constant 3 : index
    %c0_94 = arith.constant 0 : index
    %c0_95 = arith.constant 0 : index
    %249 = vector.load %arg6[%c3, %c0_94, %c0_95] : memref<4x32x16xbf16, #tpu.memory_space<vmem>>, vector<1x32x16xbf16>
    %250 = vector.shape_cast %249 : vector<1x32x16xbf16> to vector<32x16xbf16>
    %cst_96 = arith.constant dense<0.000000e+00> : vector<16x16xf32>
    %251 = tpu.matmul %203, %250, %cst_96 {dimension_numbers = #tpu.dot_dimension_numbers<[1], [0], [0], [1], [0, 0, 1, 1], [], []>} : vector<16x32xbf16>, vector<32x16xbf16>, vector<16x16xf32> -> vector<16x16xf32>
    %252 = vector.extract_strided_slice %11 {offsets = [14, 0], sizes = [1, 32], strides = [1, 1]} : vector<24x128xf32> to vector<1x32xf32>
    %253 = vector.extract_strided_slice %252 {offsets = [0, 16], sizes = [1, 16], strides = [1, 1]} : vector<1x32xf32> to vector<1x16xf32>
    %254 = vector.broadcast %253 : vector<1x16xf32> to vector<16x16xf32>
    %255 = arith.addf %251, %254 : vector<16x16xf32>
    %c3_97 = arith.constant 3 : index
    %c0_98 = arith.constant 0 : index
    %c0_99 = arith.constant 0 : index
    %256 = vector.load %arg7[%c3_97, %c0_98, %c0_99] : memref<4x32x16xbf16, #tpu.memory_space<vmem>>, vector<1x32x16xbf16>
    %257 = vector.shape_cast %256 : vector<1x32x16xbf16> to vector<32x16xbf16>
    %cst_100 = arith.constant dense<0.000000e+00> : vector<16x16xf32>
    %258 = tpu.matmul %203, %257, %cst_100 {dimension_numbers = #tpu.dot_dimension_numbers<[1], [0], [0], [1], [0, 0, 1, 1], [], []>} : vector<16x32xbf16>, vector<32x16xbf16>, vector<16x16xf32> -> vector<16x16xf32>
    %259 = vector.extract_strided_slice %11 {offsets = [15, 0], sizes = [1, 32], strides = [1, 1]} : vector<24x128xf32> to vector<1x32xf32>
    %260 = vector.extract_strided_slice %259 {offsets = [0, 16], sizes = [1, 16], strides = [1, 1]} : vector<1x32xf32> to vector<1x16xf32>
    %261 = vector.broadcast %260 : vector<1x16xf32> to vector<16x16xf32>
    %262 = arith.addf %258, %261 : vector<16x16xf32>
    %c3_101 = arith.constant 3 : index
    %c0_102 = arith.constant 0 : index
    %c0_103 = arith.constant 0 : index
    %263 = vector.load %arg8[%c3_101, %c0_102, %c0_103] : memref<4x32x16xbf16, #tpu.memory_space<vmem>>, vector<1x32x16xbf16>
    %264 = vector.shape_cast %263 : vector<1x32x16xbf16> to vector<32x16xbf16>
    %cst_104 = arith.constant dense<0.000000e+00> : vector<16x16xf32>
    %265 = tpu.matmul %203, %264, %cst_104 {dimension_numbers = #tpu.dot_dimension_numbers<[1], [0], [0], [1], [0, 0, 1, 1], [], []>} : vector<16x32xbf16>, vector<32x16xbf16>, vector<16x16xf32> -> vector<16x16xf32>
    %266 = vector.extract_strided_slice %11 {offsets = [16, 0], sizes = [1, 32], strides = [1, 1]} : vector<24x128xf32> to vector<1x32xf32>
    %267 = vector.extract_strided_slice %266 {offsets = [0, 16], sizes = [1, 16], strides = [1, 1]} : vector<1x32xf32> to vector<1x16xf32>
    %268 = vector.broadcast %267 : vector<1x16xf32> to vector<16x16xf32>
    %269 = arith.addf %265, %268 : vector<16x16xf32>
    %270 = arith.truncf %255 : vector<16x16xf32> to vector<16x16xbf16>
    %271 = arith.truncf %262 : vector<16x16xf32> to vector<16x16xbf16>
    %cst_105 = arith.constant dense<0.000000e+00> : vector<16x16xf32>
    %272 = tpu.matmul %270, %271, %cst_105 {dimension_numbers = #tpu.dot_dimension_numbers<[1], [1], [0], [0], [0, 0, 1, 0], [], []>} : vector<16x16xbf16>, vector<16x16xbf16>, vector<16x16xf32> -> vector<16x16xf32>
    %273 = arith.addf %272, %36 : vector<16x16xf32>
    %cst_106 = arith.constant dense<0xFF800000> : vector<16xf32>
    %274 = vector.multi_reduction <maximumf>, %273, %cst_106 [1] : vector<16x16xf32> to vector<16xf32>
    %275 = vector.shape_cast %274 : vector<16xf32> to vector<16x1xf32>
    %276 = vector.broadcast %275 : vector<16x1xf32> to vector<16x16xf32>
    %277 = arith.subf %273, %276 : vector<16x16xf32>
    %278 = math.exp %277 : vector<16x16xf32>
    %cst_107 = arith.constant dense<0.000000e+00> : vector<16xf32>
    %279 = vector.multi_reduction <add>, %278, %cst_107 [1] : vector<16x16xf32> to vector<16xf32>
    %280 = vector.shape_cast %279 : vector<16xf32> to vector<16x1xf32>
    %281 = tpu.reciprocal %280 {approx = true} : vector<16x1xf32> -> vector<16x1xf32>
    %282 = vector.broadcast %281 : vector<16x1xf32> to vector<16x16xf32>
    %283 = arith.mulf %278, %282 : vector<16x16xf32>
    %284 = arith.truncf %283 : vector<16x16xf32> to vector<16x16xbf16>
    %285 = arith.truncf %269 : vector<16x16xf32> to vector<16x16xbf16>
    %cst_108 = arith.constant dense<0.000000e+00> : vector<16x16xf32>
    %286 = tpu.matmul %284, %285, %cst_108 {dimension_numbers = #tpu.dot_dimension_numbers<[1], [0], [0], [1], [0, 0, 1, 1], [], []>} : vector<16x16xbf16>, vector<16x16xbf16>, vector<16x16xf32> -> vector<16x16xf32>
    %287 = arith.truncf %286 : vector<16x16xf32> to vector<16x16xbf16>
    %c3_109 = arith.constant 3 : index
    %c0_110 = arith.constant 0 : index
    %c0_111 = arith.constant 0 : index
    %288 = vector.load %arg9[%c3_109, %c0_110, %c0_111] : memref<4x16x32xbf16, #tpu.memory_space<vmem>>, vector<1x16x32xbf16>
    %289 = vector.shape_cast %288 : vector<1x16x32xbf16> to vector<16x32xbf16>
    %cst_112 = arith.constant dense<0.000000e+00> : vector<16x32xf32>
    %290 = tpu.matmul %287, %289, %cst_112 {dimension_numbers = #tpu.dot_dimension_numbers<[1], [0], [0], [1], [0, 0, 1, 1], [], []>} : vector<16x16xbf16>, vector<16x32xbf16>, vector<16x32xf32> -> vector<16x32xf32>
    %291 = arith.addf %248, %290 : vector<16x32xf32>
    %292 = arith.addf %202, %291 : vector<16x32xf32>
    %293 = vector.extract_strided_slice %11 {offsets = [18, 0], sizes = [1, 32], strides = [1, 1]} : vector<24x128xf32> to vector<1x32xf32>
    %294 = vector.extract_strided_slice %11 {offsets = [19, 0], sizes = [1, 32], strides = [1, 1]} : vector<24x128xf32> to vector<1x32xf32>
    %cst_113 = arith.constant dense<0.000000e+00> : vector<16xf32>
    %295 = vector.multi_reduction <add>, %292, %cst_113 [1] : vector<16x32xf32> to vector<16xf32>
    %296 = vector.shape_cast %295 : vector<16xf32> to vector<16x1xf32>
    %cst_114 = arith.constant 3.200000e+01 : f32
    %297 = vector.broadcast %cst_114 : f32 to vector<16x1xf32>
    %298 = arith.divf %296, %297 : vector<16x1xf32>
    %299 = vector.broadcast %298 : vector<16x1xf32> to vector<16x32xf32>
    %300 = arith.subf %292, %299 : vector<16x32xf32>
    %301 = arith.mulf %300, %300 : vector<16x32xf32>
    %cst_115 = arith.constant dense<0.000000e+00> : vector<16xf32>
    %302 = vector.multi_reduction <add>, %301, %cst_115 [1] : vector<16x32xf32> to vector<16xf32>
    %303 = vector.shape_cast %302 : vector<16xf32> to vector<16x1xf32>
    %cst_116 = arith.constant 3.200000e+01 : f32
    %304 = vector.broadcast %cst_116 : f32 to vector<16x1xf32>
    %305 = arith.divf %303, %304 : vector<16x1xf32>
    %306 = vector.broadcast %298 : vector<16x1xf32> to vector<16x32xf32>
    %307 = arith.subf %292, %306 : vector<16x32xf32>
    %cst_117 = arith.constant 9.99999996E-13 : f32
    %308 = vector.broadcast %cst_117 : f32 to vector<16x1xf32>
    %309 = arith.addf %305, %308 : vector<16x1xf32>
    %310 = math.rsqrt %309 : vector<16x1xf32>
    %311 = vector.broadcast %310 : vector<16x1xf32> to vector<16x32xf32>
    %312 = arith.mulf %307, %311 : vector<16x32xf32>
    %313 = vector.broadcast %293 : vector<1x32xf32> to vector<16x32xf32>
    %314 = arith.mulf %312, %313 : vector<16x32xf32>
    %315 = vector.broadcast %294 : vector<1x32xf32> to vector<16x32xf32>
    %316 = arith.addf %314, %315 : vector<16x32xf32>
    %317 = arith.truncf %316 : vector<16x32xf32> to vector<16x32xbf16>
    %c1_118 = arith.constant 1 : index
    %c0_119 = arith.constant 0 : index
    %c0_120 = arith.constant 0 : index
    %318 = vector.load %arg10[%c1_118, %c0_119, %c0_120] : memref<2x32x64xbf16, #tpu.memory_space<vmem>>, vector<1x32x64xbf16>
    %319 = vector.shape_cast %318 : vector<1x32x64xbf16> to vector<32x64xbf16>
    %cst_121 = arith.constant dense<0.000000e+00> : vector<16x64xf32>
    %320 = tpu.matmul %317, %319, %cst_121 {dimension_numbers = #tpu.dot_dimension_numbers<[1], [0], [0], [1], [0, 0, 1, 1], [], []>} : vector<16x32xbf16>, vector<32x64xbf16>, vector<16x64xf32> -> vector<16x64xf32>
    %321 = vector.extract_strided_slice %11 {offsets = [20, 0], sizes = [1, 64], strides = [1, 1]} : vector<24x128xf32> to vector<1x64xf32>
    %322 = vector.broadcast %321 : vector<1x64xf32> to vector<16x64xf32>
    %323 = arith.addf %320, %322 : vector<16x64xf32>
    %cst_122 = arith.constant 5.000000e-01 : f32
    %324 = vector.broadcast %cst_122 : f32 to vector<16x64xf32>
    %325 = arith.mulf %324, %323 : vector<16x64xf32>
    %cst_123 = arith.constant 4.471500e-02 : f32
    %326 = vector.broadcast %cst_123 : f32 to vector<16x64xf32>
    %327 = arith.mulf %326, %323 : vector<16x64xf32>
    %328 = arith.mulf %327, %323 : vector<16x64xf32>
    %329 = arith.mulf %328, %323 : vector<16x64xf32>
    %330 = arith.addf %323, %329 : vector<16x64xf32>
    %cst_124 = arith.constant 0.797884583 : f32
    %331 = vector.broadcast %cst_124 : f32 to vector<16x64xf32>
    %332 = arith.mulf %331, %330 : vector<16x64xf32>
    %333 = math.tanh %332 : vector<16x64xf32>
    %cst_125 = arith.constant 1.000000e+00 : f32
    %334 = vector.broadcast %cst_125 : f32 to vector<16x64xf32>
    %335 = arith.addf %334, %333 : vector<16x64xf32>
    %336 = arith.mulf %325, %335 : vector<16x64xf32>
    %337 = arith.truncf %336 : vector<16x64xf32> to vector<16x64xbf16>
    %c1_126 = arith.constant 1 : index
    %c0_127 = arith.constant 0 : index
    %c0_128 = arith.constant 0 : index
    %338 = vector.load %arg11[%c1_126, %c0_127, %c0_128] : memref<2x64x32xbf16, #tpu.memory_space<vmem>>, vector<1x64x32xbf16>
    %339 = vector.shape_cast %338 : vector<1x64x32xbf16> to vector<64x32xbf16>
    %cst_129 = arith.constant dense<0.000000e+00> : vector<16x32xf32>
    %340 = tpu.matmul %337, %339, %cst_129 {dimension_numbers = #tpu.dot_dimension_numbers<[1], [0], [0], [1], [0, 0, 1, 1], [], []>} : vector<16x64xbf16>, vector<64x32xbf16>, vector<16x32xf32> -> vector<16x32xf32>
    %341 = vector.extract_strided_slice %11 {offsets = [21, 0], sizes = [1, 32], strides = [1, 1]} : vector<24x128xf32> to vector<1x32xf32>
    %342 = vector.broadcast %341 : vector<1x32xf32> to vector<16x32xf32>
    %343 = arith.addf %340, %342 : vector<16x32xf32>
    %344 = arith.addf %316, %343 : vector<16x32xf32>
    %345 = vector.extract_strided_slice %11 {offsets = [22, 0], sizes = [1, 32], strides = [1, 1]} : vector<24x128xf32> to vector<1x32xf32>
    %346 = vector.extract_strided_slice %11 {offsets = [23, 0], sizes = [1, 32], strides = [1, 1]} : vector<24x128xf32> to vector<1x32xf32>
    %cst_130 = arith.constant dense<0.000000e+00> : vector<16xf32>
    %347 = vector.multi_reduction <add>, %344, %cst_130 [1] : vector<16x32xf32> to vector<16xf32>
    %348 = vector.shape_cast %347 : vector<16xf32> to vector<16x1xf32>
    %cst_131 = arith.constant 3.200000e+01 : f32
    %349 = vector.broadcast %cst_131 : f32 to vector<16x1xf32>
    %350 = arith.divf %348, %349 : vector<16x1xf32>
    %351 = vector.broadcast %350 : vector<16x1xf32> to vector<16x32xf32>
    %352 = arith.subf %344, %351 : vector<16x32xf32>
    %353 = arith.mulf %352, %352 : vector<16x32xf32>
    %cst_132 = arith.constant dense<0.000000e+00> : vector<16xf32>
    %354 = vector.multi_reduction <add>, %353, %cst_132 [1] : vector<16x32xf32> to vector<16xf32>
    %355 = vector.shape_cast %354 : vector<16xf32> to vector<16x1xf32>
    %cst_133 = arith.constant 3.200000e+01 : f32
    %356 = vector.broadcast %cst_133 : f32 to vector<16x1xf32>
    %357 = arith.divf %355, %356 : vector<16x1xf32>
    %358 = vector.broadcast %350 : vector<16x1xf32> to vector<16x32xf32>
    %359 = arith.subf %344, %358 : vector<16x32xf32>
    %cst_134 = arith.constant 9.99999996E-13 : f32
    %360 = vector.broadcast %cst_134 : f32 to vector<16x1xf32>
    %361 = arith.addf %357, %360 : vector<16x1xf32>
    %362 = math.rsqrt %361 : vector<16x1xf32>
    %363 = vector.broadcast %362 : vector<16x1xf32> to vector<16x32xf32>
    %364 = arith.mulf %359, %363 : vector<16x32xf32>
    %365 = vector.broadcast %345 : vector<1x32xf32> to vector<16x32xf32>
    %366 = arith.mulf %364, %365 : vector<16x32xf32>
    %367 = vector.broadcast %346 : vector<1x32xf32> to vector<16x32xf32>
    %368 = arith.addf %366, %367 : vector<16x32xf32>
    %369 = arith.truncf %368 : vector<16x32xf32> to vector<16x32xbf16>
    %c0_135 = arith.constant 0 : index
    %c0_136 = arith.constant 0 : index
    %370 = vector.load %arg12[%c0_135, %c0_136] : memref<32x32xbf16, #tpu.memory_space<vmem>>, vector<32x32xbf16>
    %cst_137 = arith.constant dense<0.000000e+00> : vector<16x32xf32>
    %371 = tpu.matmul %369, %370, %cst_137 {dimension_numbers = #tpu.dot_dimension_numbers<[1], [0], [0], [1], [0, 0, 1, 1], [], []>} : vector<16x32xbf16>, vector<32x32xbf16>, vector<16x32xf32> -> vector<16x32xf32>
    %372 = vector.extract_strided_slice %11 {offsets = [2, 0], sizes = [1, 32], strides = [1, 1]} : vector<24x128xf32> to vector<1x32xf32>
    %373 = vector.broadcast %372 : vector<1x32xf32> to vector<16x32xf32>
    %374 = arith.addf %371, %373 : vector<16x32xf32>
    %375 = math.tanh %374 : vector<16x32xf32>
    %376 = arith.truncf %375 : vector<16x32xf32> to vector<16x32xbf16>
    %c0_138 = arith.constant 0 : index
    %c0_139 = arith.constant 0 : index
    %377 = vector.load %arg13[%c0_138, %c0_139] : memref<32x128xbf16, #tpu.memory_space<vmem>>, vector<32x128xbf16>
    %cst_140 = arith.constant dense<0.000000e+00> : vector<16x128xf32>
    %378 = tpu.matmul %376, %377, %cst_140 {dimension_numbers = #tpu.dot_dimension_numbers<[1], [0], [0], [1], [0, 0, 1, 1], [], []>} : vector<16x32xbf16>, vector<32x128xbf16>, vector<16x128xf32> -> vector<16x128xf32>
    %379 = vector.extract_strided_slice %11 {offsets = [3, 0], sizes = [1, 128], strides = [1, 1]} : vector<24x128xf32> to vector<1x128xf32>
    %380 = vector.broadcast %379 : vector<1x128xf32> to vector<16x128xf32>
    %381 = arith.addf %378, %380 : vector<16x128xf32>
    %c0_141 = arith.constant 0 : index
    %c0_142 = arith.constant 0 : index
    %382 = vector.load %arg14[%c0_141, %c0_142] : memref<16x128xf32, #tpu.memory_space<vmem>>, vector<16x128xf32>
    tpu.vector_store %arg14[%c0_141, %c0_142], %381 {strides = array<i32>} : memref<16x128xf32, #tpu.memory_space<vmem>>, vector<16x128xf32>,
    return
  }
  func.func @transform_0(%arg0: i32) -> (i32, i32) {
    %c0_i32 = arith.constant 0 : i32
    %c0_i32_0 = arith.constant 0 : i32
    %c0_i32_1 = arith.constant 0 : i32
    return %c0_i32, %c0_i32_0 : i32, i32
  }
  func.func @transform_1(%arg0: i32) -> (i32, i32) {
    %c0_i32 = arith.constant 0 : i32
    %c0_i32_0 = arith.constant 0 : i32
    %c0_i32_1 = arith.constant 0 : i32
    return %c0_i32, %c0_i32_0 : i32, i32
  }
  func.func @transform_2(%arg0: i32) -> (i32, i32) {
    %c0_i32 = arith.constant 0 : i32
    %c0_i32_0 = arith.constant 0 : i32
    %c0_i32_1 = arith.constant 0 : i32
    return %c0_i32, %c0_i32_0 : i32, i32
  }
  func.func @transform_3(%arg0: i32) -> (i32, i32) {
    %c0_i32 = arith.constant 0 : i32
    %c0_i32_0 = arith.constant 0 : i32
    %c0_i32_1 = arith.constant 0 : i32
    return %c0_i32, %c0_i32_0 : i32, i32
  }
  func.func @transform_4(%arg0: i32) -> (i32, i32) {
    %c0_i32 = arith.constant 0 : i32
    %c0_i32_0 = arith.constant 0 : i32
    %c0_i32_1 = arith.constant 0 : i32
    return %c0_i32, %c0_i32_0 : i32, i32
  }
  func.func @transform_5(%arg0: i32) -> (i32, i32, i32) {
    %c0_i32 = arith.constant 0 : i32
    %c0_i32_0 = arith.constant 0 : i32
    %c0_i32_1 = arith.constant 0 : i32
    %c0_i32_2 = arith.constant 0 : i32
    return %c0_i32, %c0_i32_0, %c0_i32_1 : i32, i32, i32
  }
  func.func @transform_6(%arg0: i32) -> (i32, i32, i32) {
    %c0_i32 = arith.constant 0 : i32
    %c0_i32_0 = arith.constant 0 : i32
    %c0_i32_1 = arith.constant 0 : i32
    %c0_i32_2 = arith.constant 0 : i32
    return %c0_i32, %c0_i32_0, %c0_i32_1 : i32, i32, i32
  }
  func.func @transform_7(%arg0: i32) -> (i32, i32, i32) {
    %c0_i32 = arith.constant 0 : i32
    %c0_i32_0 = arith.constant 0 : i32
    %c0_i32_1 = arith.constant 0 : i32
    %c0_i32_2 = arith.constant 0 : i32
    return %c0_i32, %c0_i32_0, %c0_i32_1 : i32, i32, i32
  }
  func.func @transform_8(%arg0: i32) -> (i32, i32, i32) {
    %c0_i32 = arith.constant 0 : i32
    %c0_i32_0 = arith.constant 0 : i32
    %c0_i32_1 = arith.constant 0 : i32
    %c0_i32_2 = arith.constant 0 : i32
    return %c0_i32, %c0_i32_0, %c0_i32_1 : i32, i32, i32
  }
  func.func @transform_9(%arg0: i32) -> (i32, i32, i32) {
    %c0_i32 = arith.constant 0 : i32
    %c0_i32_0 = arith.constant 0 : i32
    %c0_i32_1 = arith.constant 0 : i32
    %c0_i32_2 = arith.constant 0 : i32
    return %c0_i32, %c0_i32_0, %c0_i32_1 : i32, i32, i32
  }
  func.func @transform_10(%arg0: i32) -> (i32, i32, i32) {
    %c0_i32 = arith.constant 0 : i32
    %c0_i32_0 = arith.constant 0 : i32
    %c0_i32_1 = arith.constant 0 : i32
    %c0_i32_2 = arith.constant 0 : i32
    return %c0_i32, %c0_i32_0, %c0_i32_1 : i32, i32, i32
  }
  func.func @transform_11(%arg0: i32) -> (i32, i32) {
    %c0_i32 = arith.constant 0 : i32
    %c0_i32_0 = arith.constant 0 : i32
    %c0_i32_1 = arith.constant 0 : i32
    return %c0_i32, %c0_i32_0 : i32, i32
  }
  func.func @transform_12(%arg0: i32) -> (i32, i32) {
    %c0_i32 = arith.constant 0 : i32
    %c0_i32_0 = arith.constant 0 : i32
    %c0_i32_1 = arith.constant 0 : i32
    return %c0_i32, %c0_i32_0 : i32, i32
  }
  func.func @transform_13(%arg0: i32) -> (i32, i32) {
    %c0_i32 = arith.constant 0 : i32
    %c0_i32_0 = arith.constant 0 : i32
    %c0_i32_1 = arith.constant 0 : i32
    return %c0_i32, %c0_i32_0 : i32, i32
  }
}

</mosaic_0001>

<bundles_post_ra>
// kernel: emotion_classifier_forward.1
= control target key start
LH: loop header
LB: loop body
LE: loop exit
PB: predicated region body
PF: predicated region fallthrough
CT: control target
= control target key end

     0   :  { %v2839_v0 = vmov 0   ;;  %v2840_v2 = vmov 0.0   ;;  %vm2841_vm0 = vmmov 0   ;;  %v47_v8 = vlaneseq  ;;  %s3434_s0 = inlined_call_operand.vmem [shape: s32[16,1], index: 0, kind: input, shape index: {}]   ;;  %s3435_s4 = inlined_call_operand.vmem [shape: bf16[64,32], index: 4, kind: input, shape index: {}]   ;;  %s3436_s2 = inlined_call_operand.vmem [shape: f32[16,32], index: 2, kind: input, shape index: {}]   ;;  %s3437_s5 = inlined_call_operand.vmem [shape: bf16[4,32,16], index: 5, kind: input, shape index: {}]   ;;  %s3438_s7 = inlined_call_operand.vmem [shape: bf16[4,32,16], index: 7, kind: input, shape index: {}]   ;;  %s3439_s6 = inlined_call_operand.vmem [shape: bf16[4,32,16], index: 6, kind: input, shape index: {}]   ;;  %s3440_s3 = inlined_call_operand.vmem [shape: f32[24,128], index: 3, kind: input, shape index: {}]   ;;  %s3441_s1 = inlined_call_operand.vmem [shape: f32[16,16], index: 1, kind: input, shape index: {}]   ;;  %s3442_s8 = inlined_call_operand.vmem [shape: bf16[4,16,32], index: 8, kind: input, shape index: {}]   ;;  %s3443_s9 = inlined_call_operand.vmem [shape: bf16[2,32,64], index: 9, kind: input, shape index: {}]   ;;  %s3444_s10 = inlined_call_operand.vmem [shape: bf16[2,64,32], index: 10, kind: input, shape index: {}]   ;;  %s3445_s11 = inlined_call_operand.vmem [shape: bf16[32,32], index: 11, kind: input, shape index: {}]   ;;  %s3446_s12 = inlined_call_operand.vmem [shape: bf16[32,128], index: 12, kind: input, shape index: {}]   ;;  %s3447_s13 = inlined_call_operand.vmem [shape: f32[16,128], index: 13, kind: output, shape index: {}]  }
   0x1   :  { %2725 = vset.pattern.permute.xlu0 %v2839_v0  ;;  %v45_v1 = vld [vmem:[%s3434_s0] sm:$0xff]  ;;  %2485 = vmatprep.subr.bf16.mxu0 %v2840_v2  ;;  %v46_v4 = vld [vmem:[%s3434_s0 + $0x8] sm:$0xff]  ;;  %v2728_v6 = vld [vmem:[%s3435_s4 + $0x10] sm:$0xff]   ;;  %vm96_vm3 = vcmask 523264   ;;  %vm144_vm4 = vcmask 261120   ;;  %vm375_vm5 = vcmask 130048  }
   0x2   :  { %50 = vperm.xlu0 %2725, %v45_v1   ;;  %v2726_v3 = vld [vmem:[%s3435_s4] sm:$0xff]   ;;  %2497 = vmatprep.subr.bf16.mxu1 %v2840_v2  ;;  %v2727_v5 = vld [vmem:[%s3435_s4 + $0x8] sm:$0xff]   ;;  %v2729_v7 = vld [vmem:[%s3435_s4 + $0x18] sm:$0xff]   ;;  %v48_v9 = vand.u32 127, %v47_v8  ;;  %v2972_v45 = vshrl.u32 %v47_v8, 7 }
   0x3   :  { %2486 = vmatpush3.bf16.msra.mxu0 %v2726_v3  ;;  %2493 = vmatprep.mubr.msk.bf16.mxu0 %vm2841_vm0, %v2840_v2  ;;  %v70_v15 = vld [vmem:[%s3436_s2] sm:$0xff]  ;;  %v71_v17 = vld [vmem:[%s3436_s2 + $0x8] sm:$0xff] }
   0x4   :  { %2487 = vmatprep.subr.bf16.mxu0 %v2840_v2  ;;  %2501 = vmatprep.mubr.msk.bf16.mxu1 %vm2841_vm0, %v2840_v2  ;;  %v2730_v35 = vld [vmem:[%s3437_s5] sm:$0xff]   ;;  %v2732_v37 = vld [vmem:[%s3437_s5 + $0x8] sm:$0xff]   ;;  %v2975_v46 = vsub.s32 0, %v2972_v45  ;;  %v2985_v50 = vsub.s32 1, %v2972_v45  ;;  %v3018_v62 = vsub.s32 4, %v2972_v45  ;;  %v3021_v63 = vsub.s32 6, %v2972_v45 }
   0x5   :  { %v2731_v36 = vld [vmem:[%s3438_s7] sm:$0xff]   ;;  %2498 = vmatpush3.bf16.msra.mxu1 %v2730_v35  ;;  %v2733_v38 = vld [vmem:[%s3438_s7 + $0x8] sm:$0xff]  }
   0x6   :  { %53 = vperm.xlu0 %2725, %v46_v4   ;;  %2499 = vmatprep.subr.bf16.mxu1 %v2840_v2  ;;  %v2980_v47 = vld [vmem:[%s3440_s3] sm:$0xff]  ;;  %v2735_v61 = vld [vmem:[%s3439_s6 + $0x8] sm:$0xff]  }
   0x7   :  { %2488 = vmatpush3.bf16.msra.mxu0 %v2727_v5  ;;  %v175_v49 = vrot.slane %v2980_v47, %v2975_v46  ;;  %v181_v53 = vrot.slane %v2980_v47, %v2985_v50  ;;  %v2734_v59 = vld [vmem:[%s3439_s6] sm:$0xff]   ;;  %v194_v0 = vrot.slane %v2980_v47, %v3018_v62  ;;  %v3027_v1 = vrot.slane %v2980_v47, %v3021_v63 }
   0x8   :  { %2489 = vmatprep.subr.bf16.mxu0 %v2840_v2 }
   0x9   :  { %2500 = vmatpush3.bf16.msra.mxu1 %v2732_v37 }
   0xa   :  { %2505 = vmatprep.subr.bf16.mxu1 %v2840_v2 }
   0xb   :  { %2490 = vmatpush3.bf16.msra.mxu0 %v2728_v6 }
   0xc   :  { %2491 = vmatprep.subr.bf16.mxu0 %v2840_v2 }
   0xf   :  { %2492 = vmatpush3.bf16.msra.mxu0 %v2729_v7 }
  0x10   :  { %2513 = vmatprep.subr.bf16.mxu0 %v2840_v2 }
  0x81   :  { %v51_v10 = vpop.permute.xlu0 %50 }
  0x82   :  { %vm55_vm1 = vcmp.eq.s32.totalorder %v48_v9, %v51_v10 }
  0x83   :  { %v2263_v12 = vsel %vm55_vm1, 1.0, %v2840_v2 }
  0x85   :  { %v54_v11 = vpop.permute.xlu0 %53 }
  0x86   :  { %vm56_vm2 = vcmp.eq.s32.totalorder %v48_v9, %v54_v11  ;;  %v3030_v9 = vsub.s32 5, %v2972_v45 }
  0x87   :  { %v2264_v13 = vsel %vm56_vm2, 1.0, %v2840_v2 }
  0x88   :  { %v61_v14 = vpack.c.bf16 %v2264_v13, %v2263_v12 }
  0x8a   :  { %2494 = vmatmul.mubr.msk.bf16.vlgmr.msra.gmra.mrb[0].mxu0 %vm96_vm3, %v61_v14 }
  0x8b   :  { %2517 = vmatprep.mubr.msk.bf16.mxu0 %vm2841_vm0, %v2840_v2  ;;  %2514 = vmatpush3.bf16.msra.mxu0 %v2731_v36 }
  0x8c   :  { %2515 = vmatprep.subr.bf16.mxu0 %v2840_v2 }
  0x8f   :  { %2516 = vmatpush3.bf16.msra.mxu0 %v2733_v38 }
  0x90   :  { %2527 = vmatprep.subr.bf16.mxu0 %v2840_v2 }
 0x15d   :  { %v134_v16 = vpop.f32.mrb[0].mxu0 }
 0x15e   :  { %v135_v18 = vadd.f32 %v134_v16, %v70_v15  ;;  %v2495_v19 = vpop.f32.mrb[1].mxu0 }
 0x15f   :  { %v137_v20 = vpop.f32.mrb[2].mxu0 }
 0x160   :  { %v138_v21 = vadd.f32 %v137_v20, %v71_v17  ;;  %v2496_v22 = vpop.f32.mrb[3].mxu0  ;;  %v145_v23 = vsel %vm144_vm4, %v135_v18, 0.0 }
 0x161   :  { %146 = vadd.xlane.f32.xlu1 %v145_v23 }
 0x162   :  { %v148_v24 = vsel %vm144_vm4, %v138_v21, 0.0 }
 0x165   :  { %149 = vadd.xlane.f32.xlu1 %v148_v24 }
 0x1ee   :  { %v147_v25 = vpop.xlane.xlu1 %146 }
 0x1ef   :  { %v152_v26 = vmul.f32 0.03125, %v147_v25 }
 0x1f1   :  { %v154_v27 = vsub.f32 %v135_v18, %v152_v26  ;;  %v258_v18 = vrot.slane %v2980_v47, %v3030_v9 }
 0x1f2   :  { %v150_v28 = vpop.xlane.xlu1 %149 }
 0x1f3   :  { %v153_v29 = vmul.f32 0.03125, %v150_v28  ;;  %v156_v30 = vmul.f32 %v154_v27, %v154_v27 }
 0x1f5   :  { %v155_v31 = vsub.f32 %v138_v21, %v153_v29  ;;  %v158_v32 = vsel %vm144_vm4, %v156_v30, 0.0  ;;  %v3050_v29 = vld [vmem:[%s3441_s1 + $0x8] sm:$0xff] }
 0x1f6   :  { %159 = vadd.xlane.f32.xlu0 %v158_v32 }
 0x1f7   :  { %v157_v33 = vmul.f32 %v155_v31, %v155_v31 }
 0x1f9   :  { %v161_v34 = vsel %vm144_vm4, %v157_v33, 0.0 }
 0x1fa   :  { %162 = vadd.xlane.f32.xlu1 %v161_v34 }
 0x283   :  { %v160_v39 = vpop.xlane.xlu0 %159 }
 0x284   :  { %v164_v40 = vmul.f32 0.03125, %v160_v39 }
 0x286   :  { %v166_v41 = vadd.f32 1e-12, %v164_v40 }
 0x287   :  { %v163_v42 = vpop.xlane.xlu1 %162 }
 0x288   :  { %2774 = vrsqrt.f32 %v166_v41  ;;  %v165_v43 = vmul.f32 0.03125, %v163_v42 }
 0x28a   :  { %v167_v44 = vadd.f32 1e-12, %v165_v43 }
 0x28c   :  { %2776 = vrsqrt.f32 %v167_v44 }
 0x292   :  { %v2775_v48 = vpop.eup %2774 }
 0x293   :  { %v170_v51 = vmul.f32 %v2775_v48, %v154_v27  ;;  %v3045_v27 = vld [vmem:[%s3441_s1] sm:$0xff]  ;;  %s2842_s1 = smov 112  }
 0x294   :  { %568 = vrot.lane.b32.xlu0 %v194_v0, %s2842_s1 }
 0x295   :  { %v176_v54 = vmul.f32 %v175_v49, %v170_v51  ;;  %v2740_v51 = vld [vmem:[%s3442_s8] sm:$0xff]  }
 0x296   :  { %v2777_v52 = vpop.eup %2776 }
 0x297   :  { %v171_v55 = vmul.f32 %v2777_v52, %v155_v31  ;;  %v2989_v57 = vadd.f32 %v181_v53, %v176_v54 }
 0x299   :  { %v177_v56 = vmul.f32 %v175_v49, %v171_v55 }
 0x29b   :  { %v2991_v58 = vadd.f32 %v181_v53, %v177_v56 }
 0x29d   :  { %v2998_v60 = vpack.c.bf16 %v2991_v58, %v2989_v57 }
 0x29f   :  { %2502 = vmatmul.mubr.msk.bf16.vlgmr.msra.gmra.mrb[0].mxu1 %vm144_vm4, %v2998_v60  ;;  %2518 = vmatmul.mubr.msk.bf16.vlgmr.msra.gmra.mrb[4].mxu0 %vm144_vm4, %v2998_v60 }
 0x2a0   :  { %2506 = vmatpush3.bf16.msra.mxu1 %v2734_v59  ;;  %2509 = vmatprep.mubr.msk.bf16.mxu1 %vm2841_vm0, %v2840_v2 }
 0x2a1   :  { %2507 = vmatprep.subr.bf16.mxu1 %v2840_v2  ;;  %2529 = vmatprep.mubr.msk.bf16.mxu0 %vm2841_vm0, %v2840_v2 }
 0x2a4   :  { %2508 = vmatpush3.bf16.msra.mxu1 %v2735_v61  ;;  %v2736_v61 = vld [vmem:[%s3437_s5 + $0x10] sm:$0xff]  }
 0x2a5   :  { %2521 = vmatprep.subr.bf16.mxu1 %v2840_v2 }
 0x2a7   :  { %2510 = vmatmul.mubr.msk.bf16.vlgmr.msra.gmra.mrb[4].mxu1 %vm144_vm4, %v2998_v60 }
 0x2a8   :  { %2523 = vmatprep.mubr.msk.bf16.mxu1 %vm2841_vm0, %v2840_v2 }
 0x372   :  { %v244_v3 = vpop.f32.mrb[0].mxu1  ;;  %v366_v4 = vpop.f32.mrb[4].mxu0 }
 0x373   :  { %v2503_v5 = vpop.f32.mrb[1].mxu1  ;;  %v2519_v6 = vpop.f32.mrb[5].mxu0  ;;  %v245_v10 = vadd.f32 %v244_v3, %v194_v0  ;;  %v367_v11 = vadd.f32 %v366_v4, %v3027_v1  ;;  %v2737_v3 = vld [vmem:[%s3437_s5 + $0x18] sm:$0xff]   ;;  %v2738_v4 = vld [vmem:[%s3438_s7 + $0x10] sm:$0xff]  }
 0x374   :  { %v247_v7 = vpop.f32.mrb[2].mxu1  ;;  %v369_v8 = vpop.f32.mrb[6].mxu0  ;;  %v2739_v5 = vld [vmem:[%s3438_s7 + $0x18] sm:$0xff]  }
 0x375   :  { %v248_v12 = vadd.f32 %v247_v7, %v194_v0  ;;  %v370_v13 = vadd.f32 %v369_v8, %v3027_v1  ;;  %v2504_v14 = vpop.f32.mrb[3].mxu1  ;;  %v2520_v15 = vpop.f32.mrb[7].mxu0 }
 0x376   :  { %v569_v14 = vpop.permute.xlu0 %568 }
 0x377   :  { %v373_v16 = vpack.c.bf16 %v248_v12, %v245_v10  ;;  %v446_v17 = vpack.c.bf16 %v370_v13, %v367_v11  ;;  %v2741_v10 = vld [vmem:[%s3439_s6 + $0x10] sm:$0xff]   ;;  %v2742_v13 = vld [vmem:[%s3439_s6 + $0x18] sm:$0xff]  }
 0x379   :  { %2528 = vmatpush3.bf16.msra.mxu0 %v446_v17 }
 0x37a   :  { %v305_v19 = vpop.f32.mrb[4].mxu1  ;;  %2539 = vmatprep.subr.bf16.mxu0 %v2840_v2 }
 0x37b   :  { %v2511_v20 = vpop.f32.mrb[5].mxu1  ;;  %v306_v22 = vadd.f32 %v305_v19, %v258_v18 }
 0x37c   :  { %v308_v21 = vpop.f32.mrb[6].mxu1 }
 0x37d   :  { %v309_v23 = vadd.f32 %v308_v21, %v258_v18  ;;  %v2512_v24 = vpop.f32.mrb[7].mxu1 }
 0x37f   :  { %v374_v25 = vpack.c.bf16 %v309_v23, %v306_v22 }
 0x381   :  { %v380_v26 = vsel %vm375_vm5, %v374_v25, 0 }
 0x382   :  { %2522 = vmatpush3.bf16.xpose.msra.mxu1 %v380_v26 }
 0x383   :  { %2533 = vmatprep.subr.bf16.mxu1 %v2840_v2 }
 0x389   :  { %2524 = vmatmul.mubr.msk.bf16.vlgmr.msra.gmra.mrb[8].mxu1 %vm375_vm5, %v373_v16 }
 0x38a   :  { %2535 = vmatprep.mubr.msk.bf16.mxu1 %vm2841_vm0, %v2840_v2  ;;  %2534 = vmatpush3.bf16.msra.mxu1 %v2740_v51 }
 0x38b   :  { %2547 = vmatprep.subr.bf16.mxu1 %v2840_v2 }
 0x45c   :  { %v416_v28 = vpop.f32.mrb[8].mxu1 }
 0x45d   :  { %v417_v30 = vadd.f32 %v416_v28, %v3045_v27  ;;  %v2525_v31 = vpop.f32.mrb[9].mxu1 }
 0x45e   :  { %v419_v32 = vpop.f32.mrb[10].mxu1 }
 0x45f   :  { %v420_v33 = vadd.f32 %v419_v32, %v3050_v29  ;;  %v2526_v34 = vpop.f32.mrb[11].mxu1  ;;  %v423_v35 = vsel %vm375_vm5, %v417_v30, -inf }
 0x460   :  { %424 = vmax.xlane.f32.xlu1 %v423_v35 }
 0x461   :  { %v426_v36 = vsel %vm375_vm5, %v420_v33, -inf }
 0x464   :  { %427 = vmax.xlane.f32.xlu1 %v426_v36 }
 0x4ed   :  { %v425_v37 = vpop.xlane.xlu1 %424 }
 0x4ee   :  { %v429_v38 = vsub.f32 %v417_v30, %v425_v37 }
 0x4f0   :  { %v431_v39 = vmul.f32 1.442695, %v429_v38 }
 0x4f1   :  { %v428_v40 = vpop.xlane.xlu1 %427 }
 0x4f2   :  { %2778 = vpow2.f32 %v431_v39  ;;  %v430_v41 = vsub.f32 %v420_v33, %v428_v40 }
 0x4f4   :  { %v433_v42 = vmul.f32 1.442695, %v430_v41 }
 0x4f6   :  { %2780 = vpow2.f32 %v433_v42 }
 0x4fc   :  { %v2779_v43 = vpop.eup %2778 }
 0x4fd   :  { %v435_v44 = vsel %vm375_vm5, %v2779_v43, 0.0 }
 0x4fe   :  { %436 = vadd.xlane.f32.xlu1 %v435_v44 }
 0x500   :  { %v2781_v48 = vpop.eup %2780 }
 0x501   :  { %v438_v49 = vsel %vm375_vm5, %v2781_v48, 0.0 }
 0x502   :  { %439 = vadd.xlane.f32.xlu1 %v438_v49 }
 0x513   :  { %630 = vrot.lane.b32.xlu1 %v258_v18, %s2842_s1 }
 0x58b   :  { %v437_v52 = vpop.xlane.xlu1 %436 }
 0x58c   :  { %2782 = vrcp.f32 %v437_v52 }
 0x58f   :  { %v440_v53 = vpop.xlane.xlu1 %439 }
 0x590   :  { %2784 = vrcp.f32 %v440_v53 }
 0x593   :  { %v631_v32 = vpop.permute.xlu1 %630 }
 0x596   :  { %v2783_v54 = vpop.eup %2782 }
 0x597   :  { %v443_v56 = vmul.f32 %v2783_v54, %v2779_v43 }
 0x59a   :  { %v2785_v55 = vpop.eup %2784 }
 0x59b   :  { %v444_v59 = vmul.f32 %v2785_v55, %v2781_v48 }
 0x59d   :  { %v445_v0 = vpack.c.bf16 %v444_v59, %v443_v56 }
 0x59f   :  { %2530 = vmatmul.mubr.msk.bf16.vlgmr.msra.gmra.mrb[8].mxu0 %vm375_vm5, %v445_v0 }
 0x5a0   :  { %2540 = vmatpush3.bf16.msra.mxu0 %v2736_v61  ;;  %2543 = vmatprep.mubr.msk.bf16.mxu0 %vm2841_vm0, %v2840_v2 }
 0x5a1   :  { %2541 = vmatprep.subr.bf16.mxu0 %v2840_v2 }
 0x5a4   :  { %2542 = vmatpush3.bf16.msra.mxu0 %v2737_v3 }
 0x5a5   :  { %2555 = vmatprep.subr.bf16.mxu0 %v2840_v2 }
 0x5a7   :  { %2544 = vmatmul.mubr.msk.bf16.vlgmr.msra.gmra.mrb[12].mxu0 %vm144_vm4, %v2998_v60 }
 0x5a8   :  { %2556 = vmatpush3.bf16.msra.mxu0 %v2738_v4  ;;  %2559 = vmatprep.mubr.msk.bf16.mxu0 %vm2841_vm0, %v2840_v2 }
 0x5a9   :  { %2557 = vmatprep.subr.bf16.mxu0 %v2840_v2 }
 0x5ac   :  { %2558 = vmatpush3.bf16.msra.mxu0 %v2739_v5  ;;  %v2743_v5 = vld [vmem:[%s3442_s8 + $0x8] sm:$0xff]  }
 0x5ad   :  { %2569 = vmatprep.subr.bf16.mxu0 %v2840_v2 }
 0x5af   :  { %2560 = vmatmul.mubr.msk.bf16.vlgmr.msra.gmra.mrb[16].mxu0 %vm144_vm4, %v2998_v60 }
 0x5b0   :  { %2571 = vmatprep.mubr.msk.bf16.mxu0 %vm2841_vm0, %v2840_v2 }
 0x672   :  { %v484_v6 = vpop.f32.mrb[8].mxu0 }
 0x673   :  { %v2531_v7 = vpop.f32.mrb[9].mxu0 }
 0x674   :  { %v487_v8 = vpop.f32.mrb[10].mxu0 }
 0x675   :  { %v491_v11 = vpack.c.bf16 %v487_v8, %v484_v6  ;;  %v2532_v12 = vpop.f32.mrb[11].mxu0 }
 0x677   :  { %2536 = vmatmul.mubr.msk.bf16.vlgmr.msra.gmra.mrb[12].mxu1 %vm375_vm5, %v491_v11 }
 0x678   :  { %2548 = vmatpush3.bf16.msra.mxu1 %v2741_v10  ;;  %2551 = vmatprep.mubr.msk.bf16.mxu1 %vm2841_vm0, %v2840_v2 }
 0x679   :  { %2549 = vmatprep.subr.bf16.mxu1 %v2840_v2 }
 0x67a   :  { %v605_v15 = vpop.f32.mrb[12].mxu0 }
 0x67b   :  { %v2545_v16 = vpop.f32.mrb[13].mxu0  ;;  %v606_v18 = vadd.f32 %v605_v15, %v569_v14 }
 0x67c   :  { %v608_v17 = vpop.f32.mrb[14].mxu0  ;;  %2550 = vmatpush3.bf16.msra.mxu1 %v2742_v13 }
 0x67d   :  { %v609_v19 = vadd.f32 %v608_v17, %v569_v14  ;;  %v2546_v20 = vpop.f32.mrb[15].mxu0  ;;  %2563 = vmatprep.subr.bf16.mxu1 %v2840_v2 }
 0x67f   :  { %v736_v21 = vpack.c.bf16 %v609_v19, %v606_v18  ;;  %2552 = vmatmul.mubr.msk.bf16.vlgmr.msra.gmra.mrb[16].mxu1 %vm144_vm4, %v2998_v60 }
 0x680   :  { %2565 = vmatprep.mubr.msk.bf16.mxu1 %vm2841_vm0, %v2840_v2 }
 0x682   :  { %v729_v22 = vpop.f32.mrb[16].mxu0 }
 0x683   :  { %v2561_v23 = vpop.f32.mrb[17].mxu0 }
 0x684   :  { %v732_v24 = vpop.f32.mrb[18].mxu0 }
 0x685   :  { %v2562_v25 = vpop.f32.mrb[19].mxu0 }
 0x74a   :  { %v3106_v26 = vpop.f32.mrb[12].mxu1 }
 0x74b   :  { %v2537_v28 = vpop.f32.mrb[13].mxu1 }
 0x74c   :  { %v3108_v30 = vpop.f32.mrb[14].mxu1 }
 0x74d   :  { %v2538_v31 = vpop.f32.mrb[15].mxu1 }
 0x752   :  { %v667_v33 = vpop.f32.mrb[16].mxu1 }
 0x753   :  { %v2553_v34 = vpop.f32.mrb[17].mxu1  ;;  %v668_v36 = vadd.f32 %v667_v33, %v631_v32 }
 0x754   :  { %v670_v35 = vpop.f32.mrb[18].mxu1 }
 0x755   :  { %v671_v37 = vadd.f32 %v670_v35, %v631_v32  ;;  %v2554_v60 = vpop.f32.mrb[19].mxu1 }
 0x757   :  { %v737_v38 = vpack.c.bf16 %v671_v37, %v668_v36 }
 0x759   :  { %v742_v39 = vsel %vm375_vm5, %v737_v38, 0 }
 0x75a   :  { %2564 = vmatpush3.bf16.xpose.msra.mxu1 %v742_v39 }
 0x75b   :  { %2575 = vmatprep.subr.bf16.mxu1 %v2840_v2 }
 0x761   :  { %2566 = vmatmul.mubr.msk.bf16.vlgmr.msra.gmra.mrb[20].mxu1 %vm375_vm5, %v736_v21 }
 0x762   :  { %2577 = vmatprep.mubr.msk.bf16.mxu1 %vm2841_vm0, %v2840_v2  ;;  %2576 = vmatpush3.bf16.msra.mxu1 %v2743_v5 }
 0x763   :  { %2589 = vmatprep.subr.bf16.mxu1 %v2840_v2 }
 0x834   :  { %v778_v40 = vpop.f32.mrb[20].mxu1 }
 0x835   :  { %v779_v41 = vadd.f32 %v778_v40, %v3045_v27  ;;  %v2567_v42 = vpop.f32.mrb[21].mxu1 }
 0x836   :  { %v781_v43 = vpop.f32.mrb[22].mxu1 }
 0x837   :  { %v782_v44 = vadd.f32 %v781_v43, %v3050_v29  ;;  %v2568_v48 = vpop.f32.mrb[23].mxu1  ;;  %v785_v49 = vsel %vm375_vm5, %v779_v41, -inf }
 0x838   :  { %786 = vmax.xlane.f32.xlu1 %v785_v49  ;;  %v2745_v48 = vld [vmem:[%s3443_s9 + $0x8] sm:$0xff]  }
 0x839   :  { %v788_v51 = vsel %vm375_vm5, %v782_v44, -inf }
 0x83a   :  { %789 = vmax.xlane.f32.xlu0 %v788_v51 }
 0x8c5   :  { %v787_v52 = vpop.xlane.xlu1 %786 }
 0x8c6   :  { %v791_v53 = vsub.f32 %v779_v41, %v787_v52 }
 0x8c7   :  { %v790_v54 = vpop.xlane.xlu0 %789 }
 0x8c8   :  { %v793_v55 = vmul.f32 1.442695, %v791_v53  ;;  %v792_v56 = vsub.f32 %v782_v44, %v790_v54 }
 0x8ca   :  { %2786 = vpow2.f32 %v793_v55  ;;  %v795_v59 = vmul.f32 1.442695, %v792_v56  ;;  %v3158_v56 = vld [vmem:[%s3440_s3 + $0x8] sm:$0xff] }
 0x8cc   :  { %2788 = vpow2.f32 %v795_v59 }
 0x8d4   :  { %v2787_v61 = vpop.eup %2786 }
 0x8d5   :  { %v797_v0 = vsel %vm375_vm5, %v2787_v61, 0.0 }
 0x8d6   :  { %v2789_v3 = vpop.eup %2788  ;;  %798 = vadd.xlane.f32.xlu1 %v797_v0 }
 0x8d7   :  { %v800_v4 = vsel %vm375_vm5, %v2789_v3, 0.0 }
 0x8da   :  { %801 = vadd.xlane.f32.xlu1 %v800_v4 }
 0x8eb   :  { %692 = vrot.lane.b32.xlu1 %v3027_v1, %s2842_s1 }
 0x963   :  { %v799_v6 = vpop.xlane.xlu1 %798 }
 0x964   :  { %2790 = vrcp.f32 %v799_v6  ;;  %v946_v6 = vrot.slane %v3158_v56, %v2985_v50 }
 0x967   :  { %v802_v7 = vpop.xlane.xlu1 %801 }
 0x968   :  { %2792 = vrcp.f32 %v802_v7 }
 0x96b   :  { %v693_v8 = vpop.permute.xlu1 %692 }
 0x96c   :  { %v730_v10 = vadd.f32 %v729_v22, %v693_v8  ;;  %v733_v11 = vadd.f32 %v732_v24, %v693_v8  ;;  %v3135_v22 = vsub.s32 7, %v2972_v45 }
 0x96e   :  { %v808_v12 = vpack.c.bf16 %v733_v11, %v730_v10  ;;  %v2791_v13 = vpop.eup %2790  ;;  %v547_v23 = vrot.slane %v2980_v47, %v3135_v22 }
 0x96f   :  { %v805_v14 = vmul.f32 %v2791_v13, %v2787_v61  ;;  %v940_v61 = vrot.slane %v3158_v56, %v2975_v46  ;;  %v2747_v13 = vld [vmem:[%s3444_s10 + $0x8] sm:$0xff]  }
 0x970   :  { %2570 = vmatpush3.bf16.msra.mxu0 %v808_v12  ;;  %v548_v24 = vadd.f32 %v547_v23, %v3106_v26  ;;  %v549_v28 = vadd.f32 %v547_v23, %v3108_v30  ;;  %v2746_v12 = vld [vmem:[%s3444_s10] sm:$0xff]  }
 0x971   :  { %2581 = vmatprep.subr.bf16.mxu0 %v2840_v2 }
 0x972   :  { %v2793_v1 = vpop.eup %2792 }
 0x973   :  { %v806_v15 = vmul.f32 %v2793_v1, %v2789_v3  ;;  %v2748_v1 = vld [vmem:[%s3444_s10 + $0x10] sm:$0xff]  }
 0x975   :  { %v807_v16 = vpack.c.bf16 %v806_v15, %v805_v14  ;;  %v2749_v14 = vld [vmem:[%s3444_s10 + $0x18] sm:$0xff]   ;;  %v3184_v15 = vsub.s32 2, %v2972_v45 }
 0x977   :  { %2572 = vmatmul.mubr.msk.bf16.vlgmr.msra.gmra.mrb[20].mxu0 %vm375_vm5, %v807_v16  ;;  %v957_v16 = vrot.slane %v3158_v56, %v3184_v15 }
 0x978   :  { %2585 = vmatprep.mubr.msk.bf16.mxu0 %vm2841_vm0, %v2840_v2 }
 0xa4a   :  { %v846_v17 = vpop.f32.mrb[20].mxu0 }
 0xa4b   :  { %v2573_v18 = vpop.f32.mrb[21].mxu0 }
 0xa4c   :  { %v849_v19 = vpop.f32.mrb[22].mxu0 }
 0xa4d   :  { %v853_v20 = vpack.c.bf16 %v849_v19, %v846_v17  ;;  %v2574_v21 = vpop.f32.mrb[23].mxu0 }
 0xa4f   :  { %2578 = vmatmul.mubr.msk.bf16.vlgmr.msra.gmra.mrb[24].mxu1 %vm375_vm5, %v853_v20 }
 0xa50   :  { %2597 = vmatprep.mubr.msk.bf16.mxu1 %vm2841_vm0, %v2840_v2  ;;  %2590 = vmatpush3.bf16.msra.mxu1 %v2746_v12  ;;  %v2751_v12 = vld [vmem:[%s3438_s7 + $0x20] sm:$0xff]  }
 0xa51   :  { %2591 = vmatprep.subr.bf16.mxu1 %v2840_v2 }
 0xa54   :  { %2592 = vmatpush3.bf16.msra.mxu1 %v2747_v13  ;;  %v2752_v13 = vld [vmem:[%s3437_s5 + $0x28] sm:$0xff]  }
 0xa55   :  { %2593 = vmatprep.subr.bf16.mxu1 %v2840_v2 }
 0xa58   :  { %2594 = vmatpush3.bf16.msra.mxu1 %v2748_v1  ;;  %v2753_v1 = vld [vmem:[%s3438_s7 + $0x28] sm:$0xff]  }
 0xa59   :  { %2595 = vmatprep.subr.bf16.mxu1 %v2840_v2 }
 0xa5c   :  { %2596 = vmatpush3.bf16.msra.mxu1 %v2749_v14  ;;  %v1162_v14 = vrot.slane %v3158_v56, %v3021_v63 }
 0xa5d   :  { %2617 = vmatprep.subr.bf16.mxu1 %v2840_v2 }
 0xb22   :  { %v900_v25 = vpop.f32.mrb[24].mxu1 }
 0xb23   :  { %v907_v31 = vadd.f32 %v900_v25, %v548_v24  ;;  %v2579_v32 = vpop.f32.mrb[25].mxu1 }
 0xb24   :  { %v903_v33 = vpop.f32.mrb[26].mxu1 }
 0xb25   :  { %v908_v34 = vadd.f32 %v903_v33, %v549_v28  ;;  %v2580_v35 = vpop.f32.mrb[27].mxu1  ;;  %v909_v36 = vadd.f32 %v907_v31, %v2989_v57 }
 0xb27   :  { %v911_v37 = vsel %vm144_vm4, %v909_v36, 0.0  ;;  %v910_v60 = vadd.f32 %v908_v34, %v2991_v58  ;;  %v2744_v58 = vld [vmem:[%s3443_s9] sm:$0xff]  }
 0xb28   :  { %912 = vadd.xlane.f32.xlu0 %v911_v37  ;;  %2582 = vmatpush3.bf16.msra.mxu0 %v2744_v58 }
 0xb29   :  { %v914_v38 = vsel %vm144_vm4, %v910_v60, 0.0  ;;  %2583 = vmatprep.subr.bf16.mxu0 %v2840_v2 }
 0xb2c   :  { %915 = vadd.xlane.f32.xlu0 %v914_v38  ;;  %2584 = vmatpush3.bf16.msra.mxu0 %v2745_v48 }
 0xb2d   :  { %2601 = vmatprep.subr.bf16.mxu0 %v2840_v2 }
 0xbb5   :  { %v913_v47 = vpop.xlane.xlu0 %912 }
 0xbb6   :  { %v917_v26 = vmul.f32 0.03125, %v913_v47 }
 0xbb8   :  { %v919_v39 = vsub.f32 %v909_v36, %v917_v26 }
 0xbb9   :  { %v916_v40 = vpop.xlane.xlu0 %915 }
 0xbba   :  { %v918_v30 = vmul.f32 0.03125, %v916_v40  ;;  %v921_v41 = vmul.f32 %v919_v39, %v919_v39 }
 0xbbc   :  { %v920_v42 = vsub.f32 %v910_v60, %v918_v30  ;;  %v923_v43 = vsel %vm144_vm4, %v921_v41, 0.0 }
 0xbbd   :  { %924 = vadd.xlane.f32.xlu0 %v923_v43  ;;  %v3192_v43 = vsub.s32 3, %v2972_v45 }
 0xbbe   :  { %v922_v44 = vmul.f32 %v920_v42, %v920_v42 }
 0xbc0   :  { %v926_v57 = vsel %vm144_vm4, %v922_v44, 0.0  ;;  %v1044_v44 = vrot.slane %v3158_v56, %v3192_v43 }
 0xbc1   :  { %927 = vadd.xlane.f32.xlu0 %v926_v57 }
 0xc4a   :  { %v925_v49 = vpop.xlane.xlu0 %924 }
 0xc4b   :  { %v929_v51 = vmul.f32 0.03125, %v925_v49 }
 0xc4d   :  { %v931_v52 = vadd.f32 1e-12, %v929_v51 }
 0xc4e   :  { %v928_v53 = vpop.xlane.xlu0 %927 }
 0xc4f   :  { %2794 = vrsqrt.f32 %v931_v52  ;;  %v930_v54 = vmul.f32 0.03125, %v928_v53 }
 0xc51   :  { %v932_v55 = vadd.f32 1e-12, %v930_v54 }
 0xc53   :  { %2796 = vrsqrt.f32 %v932_v55 }
 0xc59   :  { %v2795_v59 = vpop.eup %2794 }
 0xc5a   :  { %v935_v0 = vmul.f32 %v2795_v59, %v919_v39 }
 0xc5c   :  { %v941_v4 = vmul.f32 %v940_v61, %v935_v0 }
 0xc5d   :  { %v2797_v3 = vpop.eup %2796 }
 0xc5e   :  { %v936_v5 = vmul.f32 %v2797_v3, %v920_v42  ;;  %v947_v8 = vadd.f32 %v946_v6, %v941_v4 }
 0xc60   :  { %v942_v7 = vmul.f32 %v940_v61, %v936_v5 }
 0xc62   :  { %v948_v10 = vadd.f32 %v946_v6, %v942_v7 }
 0xc64   :  { %v949_v11 = vpack.c.bf16 %v948_v10, %v947_v8 }
 0xc66   :  { %2586 = vmatmul.mubr.msk.bf16.vlgmr.msra.gmra.mrb[24].mxu0 %vm144_vm4, %v949_v11 }
 0xc67   :  { %2605 = vmatprep.mubr.msk.bf16.mxu0 %vm2841_vm0, %v2840_v2 }
 0xd39   :  { %v1007_v17 = vpop.f32.mrb[24].mxu0 }
 0xd3a   :  { %v1008_v18 = vadd.f32 %v1007_v17, %v957_v16  ;;  %v2587_v19 = vpop.f32.mrb[25].mxu0 }
 0xd3b   :  { %v1010_v20 = vpop.f32.mrb[26].mxu0 }
 0xd3c   :  { %v1016_v21 = vmul.f32 0.044715, %v1008_v18  ;;  %v1011_v23 = vadd.f32 %v1010_v20, %v957_v16  ;;  %v2588_v24 = vpop.f32.mrb[27].mxu0  ;;  %v1014_v26 = vmul.f32 0.5, %v1008_v18 }
 0xd3d   :  { %v1144_v24 = vrot.slane %v3158_v56, %v3018_v62 }
 0xd3e   :  { %v1018_v25 = vmul.f32 %v1016_v21, %v1008_v18  ;;  %v1017_v28 = vmul.f32 0.044715, %v1011_v23  ;;  %v1015_v39 = vmul.f32 0.5, %v1011_v23 }
 0xd40   :  { %v1020_v31 = vmul.f32 %v1018_v25, %v1008_v18  ;;  %v1019_v32 = vmul.f32 %v1017_v28, %v1011_v23 }
 0xd42   :  { %v1022_v33 = vadd.f32 %v1020_v31, %v1008_v18  ;;  %v1021_v34 = vmul.f32 %v1019_v32, %v1011_v23  ;;  %v1150_v31 = vrot.slane %v3158_v56, %v3030_v9 }
 0xd44   :  { %v1024_v35 = vmul.f32 0.7978846, %v1022_v33  ;;  %v1023_v36 = vadd.f32 %v1021_v34, %v1011_v23 }
 0xd46   :  { %2798 = vtanh.f32 %v1024_v35  ;;  %v1025_v37 = vmul.f32 0.7978846, %v1023_v36 }
 0xd48   :  { %2800 = vtanh.f32 %v1025_v37  ;;  %v2754_v37 = vld [vmem:[%s3439_s6 + $0x20] sm:$0xff]  }
 0xd50   :  { %v2799_v60 = vpop.eup %2798 }
 0xd51   :  { %v1028_v38 = vadd.f32 1.0, %v2799_v60 }
 0xd52   :  { %v2801_v47 = vpop.eup %2800 }
 0xd53   :  { %v1029_v40 = vadd.f32 1.0, %v2801_v47  ;;  %v1030_v30 = vmul.f32 %v1028_v38, %v1014_v26  ;;  %v2755_v38 = vld [vmem:[%s3439_s6 + $0x28] sm:$0xff]   ;;  %v3254_v47 = vld [vmem:[%s3440_s3 + $0x10] sm:$0xff] }
 0xd54   :  { %v3258_v26 = vrot.slane %v3254_v47, %v2975_v46  ;;  %v1227_v46 = vrot.slane %v3158_v56, %v3135_v22 }
 0xd55   :  { %v1031_v41 = vmul.f32 %v1029_v40, %v1015_v39 }
 0xd57   :  { %v1032_v42 = vpack.c.bf16 %v1031_v41, %v1030_v30 }
 0xd59   :  { %2598 = vmatmul.mubr.msk.bf16.vlgmr.msra.gmra.mrb[28].mxu1 %vm96_vm3, %v1032_v42 }
 0xd5a   :  { %2621 = vmatprep.mubr.msk.bf16.mxu1 %vm2841_vm0, %v2840_v2  ;;  %2618 = vmatpush3.bf16.msra.mxu1 %v2751_v12 }
 0xd5b   :  { %2619 = vmatprep.subr.bf16.mxu1 %v2840_v2 }
 0xd5e   :  { %2620 = vmatpush3.bf16.msra.mxu1 %v2753_v1 }
 0xd5f   :  { %2631 = vmatprep.subr.bf16.mxu1 %v2840_v2 }
 0xe2c   :  { %v1106_v57 = vpop.f32.mrb[28].mxu1 }
 0xe2d   :  { %v1107_v58 = vadd.f32 %v1106_v57, %v1044_v44  ;;  %v2599_v48 = vpop.f32.mrb[29].mxu1 }
 0xe2e   :  { %v1109_v49 = vpop.f32.mrb[30].mxu1 }
 0xe2f   :  { %v1110_v51 = vadd.f32 %v1109_v49, %v1044_v44  ;;  %v2600_v52 = vpop.f32.mrb[31].mxu1  ;;  %v1113_v53 = vadd.f32 %v1107_v58, %v947_v8 }
 0xe31   :  { %v1115_v54 = vsel %vm144_vm4, %v1113_v53, 0.0  ;;  %v1114_v55 = vadd.f32 %v1110_v51, %v948_v10  ;;  %v2750_v10 = vld [vmem:[%s3437_s5 + $0x20] sm:$0xff]  }
 0xe32   :  { %1116 = vadd.xlane.f32.xlu1 %v1115_v54  ;;  %2602 = vmatpush3.bf16.msra.mxu0 %v2750_v10 }
 0xe33   :  { %v1118_v59 = vsel %vm144_vm4, %v1114_v55, 0.0  ;;  %2603 = vmatprep.subr.bf16.mxu0 %v2840_v2 }
 0xe34   :  { %1119 = vadd.xlane.f32.xlu0 %v1118_v59 }
 0xe36   :  { %2604 = vmatpush3.bf16.msra.mxu0 %v2752_v13 }
 0xe37   :  { %2609 = vmatprep.subr.bf16.mxu0 %v2840_v2 }
 0xe43   :  { %1538 = vrot.lane.b32.xlu1 %v1162_v14, %s2842_s1 }
 0xebf   :  { %v1117_v61 = vpop.xlane.xlu1 %1116 }
 0xec0   :  { %v1121_v45 = vmul.f32 0.03125, %v1117_v61 }
 0xec1   :  { %v1120_v0 = vpop.xlane.xlu0 %1119 }
 0xec2   :  { %v1123_v3 = vsub.f32 %v1113_v53, %v1121_v45  ;;  %v1122_v4 = vmul.f32 0.03125, %v1120_v0 }
 0xec4   :  { %v1124_v5 = vsub.f32 %v1114_v55, %v1122_v4  ;;  %v1125_v6 = vmul.f32 %v1123_v3, %v1123_v3 }
 0xec6   :  { %v1127_v7 = vsel %vm144_vm4, %v1125_v6, 0.0  ;;  %v1126_v11 = vmul.f32 %v1124_v5, %v1124_v5 }
 0xec7   :  { %1128 = vadd.xlane.f32.xlu0 %v1127_v7 }
 0xec8   :  { %v1130_v8 = vsel %vm144_vm4, %v1126_v11, 0.0 }
 0xecb   :  { %1131 = vadd.xlane.f32.xlu0 %v1130_v8 }
 0xf54   :  { %v1129_v16 = vpop.xlane.xlu0 %1128 }
 0xf55   :  { %v1133_v17 = vmul.f32 0.03125, %v1129_v16 }
 0xf57   :  { %v1135_v18 = vadd.f32 1e-12, %v1133_v17 }
 0xf58   :  { %v1132_v19 = vpop.xlane.xlu0 %1131 }
 0xf59   :  { %2802 = vrsqrt.f32 %v1135_v18  ;;  %v1134_v20 = vmul.f32 0.03125, %v1132_v19 }
 0xf5b   :  { %v1136_v21 = vadd.f32 1e-12, %v1134_v20 }
 0xf5d   :  { %2804 = vrsqrt.f32 %v1136_v21 }
 0xf63   :  { %v2803_v23 = vpop.eup %2802 }
 0xf64   :  { %v1139_v25 = vmul.f32 %v2803_v23, %v1123_v3 }
 0xf66   :  { %v1145_v32 = vmul.f32 %v1144_v24, %v1139_v25  ;;  %v2760_v25 = vld [vmem:[%s3442_s8 + $0x10] sm:$0xff]  }
 0xf67   :  { %v2805_v28 = vpop.eup %2804 }
 0xf68   :  { %v1140_v33 = vmul.f32 %v2805_v28, %v1124_v5  ;;  %v3223_v35 = vadd.f32 %v1150_v31, %v1145_v32 }
 0xf6a   :  { %v1146_v34 = vmul.f32 %v1144_v24, %v1140_v33 }
 0xf6c   :  { %v3225_v36 = vadd.f32 %v1150_v31, %v1146_v34 }
 0xf6e   :  { %v3232_v60 = vpack.c.bf16 %v3225_v36, %v3223_v35 }
 0xf70   :  { %2606 = vmatmul.mubr.msk.bf16.vlgmr.msra.gmra.mrb[28].mxu0 %vm144_vm4, %v3232_v60  ;;  %2622 = vmatmul.mubr.msk.bf16.vlgmr.msra.gmra.mrb[32].mxu1 %vm144_vm4, %v3232_v60 }
 0xf71   :  { %2610 = vmatpush3.bf16.msra.mxu0 %v2754_v37  ;;  %2613 = vmatprep.mubr.msk.bf16.mxu0 %vm2841_vm0, %v2840_v2 }
 0xf72   :  { %2611 = vmatprep.subr.bf16.mxu0 %v2840_v2  ;;  %2633 = vmatprep.mubr.msk.bf16.mxu1 %vm2841_vm0, %v2840_v2 }
 0xf75   :  { %2612 = vmatpush3.bf16.msra.mxu0 %v2755_v38  ;;  %v2756_v38 = vld [vmem:[%s3437_s5 + $0x30] sm:$0xff]  }
 0xf76   :  { %2625 = vmatprep.subr.bf16.mxu0 %v2840_v2 }
 0xf78   :  { %2614 = vmatmul.mubr.msk.bf16.vlgmr.msra.gmra.mrb[32].mxu0 %vm144_vm4, %v3232_v60 }
 0xf79   :  { %2627 = vmatprep.mubr.msk.bf16.mxu0 %vm2841_vm0, %v2840_v2 }
0x1043   :  { %v1212_v39 = vpop.f32.mrb[28].mxu0  ;;  %v1336_v40 = vpop.f32.mrb[32].mxu1 }
0x1044   :  { %v2607_v30 = vpop.f32.mrb[29].mxu0  ;;  %v2623_v41 = vpop.f32.mrb[33].mxu1  ;;  %v1213_v57 = vadd.f32 %v1212_v39, %v1162_v14  ;;  %v1337_v58 = vadd.f32 %v1336_v40, %v3258_v26  ;;  %v2757_v40 = vld [vmem:[%s3437_s5 + $0x38] sm:$0xff]  }
0x1045   :  { %v1215_v42 = vpop.f32.mrb[30].mxu0  ;;  %v1339_v44 = vpop.f32.mrb[34].mxu1  ;;  %v2758_v30 = vld [vmem:[%s3438_s7 + $0x30] sm:$0xff]   ;;  %v2759_v41 = vld [vmem:[%s3438_s7 + $0x38] sm:$0xff]  }
0x1046   :  { %v1216_v48 = vadd.f32 %v1215_v42, %v1162_v14  ;;  %v1340_v49 = vadd.f32 %v1339_v44, %v3258_v26  ;;  %v2608_v51 = vpop.f32.mrb[31].mxu0  ;;  %v2624_v52 = vpop.f32.mrb[35].mxu1 }
0x1047   :  { %v2762_v51 = vld [vmem:[%s3439_s6 + $0x38] sm:$0xff]   ;;  %v1539_v52 = vpop.permute.xlu1 %1538 }
0x1048   :  { %v1343_v53 = vpack.c.bf16 %v1216_v48, %v1213_v57  ;;  %v1415_v54 = vpack.c.bf16 %v1340_v49, %v1337_v58  ;;  %v2761_v58 = vld [vmem:[%s3439_s6 + $0x30] sm:$0xff]  }
0x104a   :  { %2632 = vmatpush3.bf16.msra.mxu1 %v1415_v54 }
0x104b   :  { %v1274_v55 = vpop.f32.mrb[32].mxu0  ;;  %2643 = vmatprep.subr.bf16.mxu1 %v2840_v2 }
0x104c   :  { %v2615_v59 = vpop.f32.mrb[33].mxu0  ;;  %v1275_v45 = vadd.f32 %v1274_v55, %v1227_v46 }
0x104d   :  { %v1277_v61 = vpop.f32.mrb[34].mxu0 }
0x104e   :  { %v1278_v0 = vadd.f32 %v1277_v61, %v1227_v46  ;;  %v2616_v3 = vpop.f32.mrb[35].mxu0 }
0x1050   :  { %v1344_v4 = vpack.c.bf16 %v1278_v0, %v1275_v45 }
0x1052   :  { %v1349_v5 = vsel %vm375_vm5, %v1344_v4, 0 }
0x1053   :  { %2626 = vmatpush3.bf16.xpose.msra.mxu0 %v1349_v5 }
0x1054   :  { %2637 = vmatprep.subr.bf16.mxu0 %v2840_v2 }
0x105a   :  { %2628 = vmatmul.mubr.msk.bf16.vlgmr.msra.gmra.mrb[36].mxu0 %vm375_vm5, %v1343_v53 }
0x105b   :  { %2639 = vmatprep.mubr.msk.bf16.mxu0 %vm2841_vm0, %v2840_v2  ;;  %2638 = vmatpush3.bf16.msra.mxu0 %v2760_v25 }
0x105c   :  { %2651 = vmatprep.subr.bf16.mxu0 %v2840_v2 }
0x112d   :  { %v1385_v56 = vpop.f32.mrb[36].mxu0 }
0x112e   :  { %v1386_v6 = vadd.f32 %v1385_v56, %v3045_v27  ;;  %v2629_v7 = vpop.f32.mrb[37].mxu0 }
0x112f   :  { %v1388_v11 = vpop.f32.mrb[38].mxu0 }
0x1130   :  { %v1389_v8 = vadd.f32 %v1388_v11, %v3050_v29  ;;  %v2630_v10 = vpop.f32.mrb[39].mxu0  ;;  %v1392_v12 = vsel %vm375_vm5, %v1386_v6, -inf }
0x1131   :  { %1393 = vmax.xlane.f32.xlu0 %v1392_v12 }
0x1132   :  { %v1395_v13 = vsel %vm375_vm5, %v1389_v8, -inf }
0x1135   :  { %1396 = vmax.xlane.f32.xlu0 %v1395_v13 }
0x11be   :  { %v1394_v1 = vpop.xlane.xlu0 %1393 }
0x11bf   :  { %v1398_v14 = vsub.f32 %v1386_v6, %v1394_v1 }
0x11c1   :  { %v1400_v16 = vmul.f32 1.442695, %v1398_v14 }
0x11c2   :  { %v1397_v17 = vpop.xlane.xlu0 %1396 }
0x11c3   :  { %2806 = vpow2.f32 %v1400_v16  ;;  %v1399_v18 = vsub.f32 %v1389_v8, %v1397_v17 }
0x11c5   :  { %v1402_v19 = vmul.f32 1.442695, %v1399_v18 }
0x11c7   :  { %2808 = vpow2.f32 %v1402_v19 }
0x11cd   :  { %v2807_v20 = vpop.eup %2806 }
0x11ce   :  { %v1404_v21 = vsel %vm375_vm5, %v2807_v20, 0.0 }
0x11cf   :  { %1405 = vadd.xlane.f32.xlu0 %v1404_v21 }
0x11d1   :  { %v2809_v23 = vpop.eup %2808 }
0x11d2   :  { %v1407_v24 = vsel %vm375_vm5, %v2809_v23, 0.0 }
0x11d3   :  { %1408 = vadd.xlane.f32.xlu0 %v1407_v24 }
0x11e9   :  { %1600 = vrot.lane.b32.xlu0 %v1227_v46, %s2842_s1 }
0x125c   :  { %v1406_v28 = vpop.xlane.xlu0 %1405 }
0x125d   :  { %2810 = vrcp.f32 %v1406_v28 }
0x1260   :  { %v1409_v31 = vpop.xlane.xlu0 %1408 }
0x1261   :  { %2812 = vrcp.f32 %v1409_v31 }
0x1264   :  { %v1601_v8 = vpop.permute.xlu0 %1600 }
0x1267   :  { %v2811_v32 = vpop.eup %2810 }
0x1268   :  { %v1412_v34 = vmul.f32 %v2811_v32, %v2807_v20 }
0x126b   :  { %v2813_v33 = vpop.eup %2812 }
0x126c   :  { %v1413_v37 = vmul.f32 %v2813_v33, %v2809_v23 }
0x126e   :  { %v1414_v39 = vpack.c.bf16 %v1413_v37, %v1412_v34 }
0x1270   :  { %2634 = vmatmul.mubr.msk.bf16.vlgmr.msra.gmra.mrb[36].mxu1 %vm375_vm5, %v1414_v39 }
0x1271   :  { %2644 = vmatpush3.bf16.msra.mxu1 %v2756_v38  ;;  %2647 = vmatprep.mubr.msk.bf16.mxu1 %vm2841_vm0, %v2840_v2 }
0x1272   :  { %2645 = vmatprep.subr.bf16.mxu1 %v2840_v2 }
0x1275   :  { %2646 = vmatpush3.bf16.msra.mxu1 %v2757_v40 }
0x1276   :  { %2659 = vmatprep.subr.bf16.mxu1 %v2840_v2 }
0x1278   :  { %2648 = vmatmul.mubr.msk.bf16.vlgmr.msra.gmra.mrb[40].mxu1 %vm144_vm4, %v3232_v60 }
0x1279   :  { %2660 = vmatpush3.bf16.msra.mxu1 %v2758_v30  ;;  %2663 = vmatprep.mubr.msk.bf16.mxu1 %vm2841_vm0, %v2840_v2 }
0x127a   :  { %2661 = vmatprep.subr.bf16.mxu1 %v2840_v2 }
0x127d   :  { %2662 = vmatpush3.bf16.msra.mxu1 %v2759_v41 }
0x127e   :  { %2673 = vmatprep.subr.bf16.mxu1 %v2840_v2 }
0x1280   :  { %2664 = vmatmul.mubr.msk.bf16.vlgmr.msra.gmra.mrb[44].mxu1 %vm144_vm4, %v3232_v60 }
0x1281   :  { %2675 = vmatprep.mubr.msk.bf16.mxu1 %vm2841_vm0, %v2840_v2 }
0x1343   :  { %v1453_v42 = vpop.f32.mrb[36].mxu1 }
0x1344   :  { %v2635_v44 = vpop.f32.mrb[37].mxu1 }
0x1345   :  { %v1456_v57 = vpop.f32.mrb[38].mxu1  ;;  %v2763_v44 = vld [vmem:[%s3442_s8 + $0x18] sm:$0xff]  }
0x1346   :  { %v1460_v48 = vpack.c.bf16 %v1456_v57, %v1453_v42  ;;  %v2636_v49 = vpop.f32.mrb[39].mxu1 }
0x1348   :  { %2640 = vmatmul.mubr.msk.bf16.vlgmr.msra.gmra.mrb[40].mxu0 %vm375_vm5, %v1460_v48 }
0x1349   :  { %2652 = vmatpush3.bf16.msra.mxu0 %v2761_v58  ;;  %2655 = vmatprep.mubr.msk.bf16.mxu0 %vm2841_vm0, %v2840_v2 }
0x134a   :  { %2653 = vmatprep.subr.bf16.mxu0 %v2840_v2 }
0x134b   :  { %v1575_v53 = vpop.f32.mrb[40].mxu1 }
0x134c   :  { %v2649_v54 = vpop.f32.mrb[41].mxu1  ;;  %v1576_v55 = vadd.f32 %v1575_v53, %v1539_v52 }
0x134d   :  { %v1578_v46 = vpop.f32.mrb[42].mxu1  ;;  %2654 = vmatpush3.bf16.msra.mxu0 %v2762_v51 }
0x134e   :  { %v1579_v59 = vadd.f32 %v1578_v46, %v1539_v52  ;;  %v2650_v61 = vpop.f32.mrb[43].mxu1  ;;  %2667 = vmatprep.subr.bf16.mxu0 %v2840_v2 }
0x1350   :  { %v1706_v45 = vpack.c.bf16 %v1579_v59, %v1576_v55  ;;  %2656 = vmatmul.mubr.msk.bf16.vlgmr.msra.gmra.mrb[44].mxu0 %vm144_vm4, %v3232_v60 }
0x1351   :  { %2669 = vmatprep.mubr.msk.bf16.mxu0 %vm2841_vm0, %v2840_v2 }
0x1353   :  { %v1699_v0 = vpop.f32.mrb[44].mxu1 }
0x1354   :  { %v2665_v3 = vpop.f32.mrb[45].mxu1 }
0x1355   :  { %v1702_v4 = vpop.f32.mrb[46].mxu1 }
0x1356   :  { %v2666_v5 = vpop.f32.mrb[47].mxu1 }
0x141b   :  { %v3323_v56 = vpop.f32.mrb[40].mxu0 }
0x141c   :  { %v2641_v6 = vpop.f32.mrb[41].mxu0 }
0x141d   :  { %v3325_v7 = vpop.f32.mrb[42].mxu0 }
0x141e   :  { %v2642_v11 = vpop.f32.mrb[43].mxu0 }
0x1423   :  { %v1637_v10 = vpop.f32.mrb[44].mxu0 }
0x1424   :  { %v2657_v12 = vpop.f32.mrb[45].mxu0  ;;  %v1638_v1 = vadd.f32 %v1637_v10, %v1601_v8 }
0x1425   :  { %v1640_v13 = vpop.f32.mrb[46].mxu0 }
0x1426   :  { %v1641_v14 = vadd.f32 %v1640_v13, %v1601_v8  ;;  %v2658_v60 = vpop.f32.mrb[47].mxu0 }
0x1428   :  { %v1707_v16 = vpack.c.bf16 %v1641_v14, %v1638_v1 }
0x142a   :  { %v1712_v17 = vsel %vm375_vm5, %v1707_v16, 0 }
0x142b   :  { %2668 = vmatpush3.bf16.xpose.msra.mxu0 %v1712_v17 }
0x142c   :  { %2679 = vmatprep.subr.bf16.mxu0 %v2840_v2 }
0x1432   :  { %2670 = vmatmul.mubr.msk.bf16.vlgmr.msra.gmra.mrb[48].mxu0 %vm375_vm5, %v1706_v45  ;;  %v1517_v45 = vrot.slane %v3254_v47, %v2985_v50 }
0x1433   :  { %2681 = vmatprep.mubr.msk.bf16.mxu0 %vm2841_vm0, %v2840_v2  ;;  %2680 = vmatpush3.bf16.msra.mxu0 %v2763_v44  ;;  %v2767_v44 = vld [vmem:[%s3444_s10 + $0x28] sm:$0xff]  }
0x1434   :  { %2693 = vmatprep.subr.bf16.mxu0 %v2840_v2 }
0x1505   :  { %v1748_v18 = vpop.f32.mrb[48].mxu0 }
0x1506   :  { %v1749_v19 = vadd.f32 %v1748_v18, %v3045_v27  ;;  %v2671_v20 = vpop.f32.mrb[49].mxu0 }
0x1507   :  { %v1751_v21 = vpop.f32.mrb[50].mxu0 }
0x1508   :  { %v1752_v23 = vadd.f32 %v1751_v21, %v3050_v29  ;;  %v2672_v24 = vpop.f32.mrb[51].mxu0  ;;  %v1755_v25 = vsel %vm375_vm5, %v1749_v19, -inf  ;;  %v2765_v21 = vld [vmem:[%s3443_s9 + $0x18] sm:$0xff]  }
0x1509   :  { %1756 = vmax.xlane.f32.xlu0 %v1755_v25 }
0x150a   :  { %v1758_v28 = vsel %vm375_vm5, %v1752_v23, -inf }
0x150b   :  { %1759 = vmax.xlane.f32.xlu1 %v1758_v28 }
0x151c   :  { %1662 = vrot.lane.b32.xlu1 %v3258_v26, %s2842_s1 }
0x1596   :  { %v1757_v31 = vpop.xlane.xlu0 %1756 }
0x1597   :  { %v1761_v32 = vsub.f32 %v1749_v19, %v1757_v31 }
0x1598   :  { %v1760_v33 = vpop.xlane.xlu1 %1759 }
0x1599   :  { %v1763_v34 = vmul.f32 1.442695, %v1761_v32  ;;  %v1762_v37 = vsub.f32 %v1752_v23, %v1760_v33 }
0x159b   :  { %2814 = vpow2.f32 %v1763_v34  ;;  %v1765_v27 = vmul.f32 1.442695, %v1762_v37  ;;  %v1910_v34 = vrot.slane %v3254_v47, %v3184_v15 }
0x159c   :  { %v1663_v38 = vpop.permute.xlu1 %1662 }
0x159d   :  { %2816 = vpow2.f32 %v1765_v27  ;;  %v1700_v29 = vadd.f32 %v1699_v0, %v1663_v38  ;;  %v1703_v39 = vadd.f32 %v1702_v4, %v1663_v38  ;;  %v1518_v0 = vadd.f32 %v1517_v45, %v3323_v56 }
0x159e   :  { %v1519_v4 = vadd.f32 %v1517_v45, %v3325_v7  ;;  %v1916_v38 = vrot.slane %v3254_v47, %v3192_v43 }
0x159f   :  { %v1778_v40 = vpack.c.bf16 %v1703_v39, %v1700_v29 }
0x15a1   :  { %2674 = vmatpush3.bf16.msra.mxu1 %v1778_v40 }
0x15a2   :  { %2685 = vmatprep.subr.bf16.mxu1 %v2840_v2 }
0x15a5   :  { %v2815_v30 = vpop.eup %2814 }
0x15a6   :  { %v1767_v41 = vsel %vm375_vm5, %v2815_v30, 0.0 }
0x15a7   :  { %v2817_v42 = vpop.eup %2816  ;;  %1768 = vadd.xlane.f32.xlu0 %v1767_v41 }
0x15a8   :  { %v1770_v26 = vsel %vm375_vm5, %v2817_v42, 0.0 }
0x15ab   :  { %1771 = vadd.xlane.f32.xlu0 %v1770_v26  ;;  %v2766_v26 = vld [vmem:[%s3444_s10 + $0x20] sm:$0xff]  }
0x1634   :  { %v1769_v57 = vpop.xlane.xlu0 %1768 }
0x1635   :  { %2818 = vrcp.f32 %v1769_v57  ;;  %v2768_v57 = vld [vmem:[%s3444_s10 + $0x30] sm:$0xff]  }
0x1638   :  { %v1772_v58 = vpop.xlane.xlu0 %1771 }
0x1639   :  { %2820 = vrcp.f32 %v1772_v58  ;;  %v2769_v58 = vld [vmem:[%s3444_s10 + $0x38] sm:$0xff]  }
0x163f   :  { %v2819_v48 = vpop.eup %2818 }
0x1640   :  { %v1775_v51 = vmul.f32 %v2819_v48, %v2815_v30  ;;  %v1928_v48 = vrot.slane %v3254_v47, %v3018_v62 }
0x1643   :  { %v2821_v49 = vpop.eup %2820 }
0x1644   :  { %v1776_v52 = vmul.f32 %v2821_v49, %v2817_v42 }
0x1646   :  { %v1777_v53 = vpack.c.bf16 %v1776_v52, %v1775_v51 }
0x1648   :  { %2676 = vmatmul.mubr.msk.bf16.vlgmr.msra.gmra.mrb[48].mxu1 %vm375_vm5, %v1777_v53 }
0x1649   :  { %2689 = vmatprep.mubr.msk.bf16.mxu1 %vm2841_vm0, %v2840_v2 }
0x171b   :  { %v1816_v54 = vpop.f32.mrb[48].mxu1 }
0x171c   :  { %v2677_v46 = vpop.f32.mrb[49].mxu1 }
0x171d   :  { %v1819_v55 = vpop.f32.mrb[50].mxu1 }
0x171e   :  { %v1823_v59 = vpack.c.bf16 %v1819_v55, %v1816_v54  ;;  %v2678_v61 = vpop.f32.mrb[51].mxu1 }
0x1720   :  { %2682 = vmatmul.mubr.msk.bf16.vlgmr.msra.gmra.mrb[52].mxu0 %vm375_vm5, %v1823_v59 }
0x1721   :  { %2701 = vmatprep.mubr.msk.bf16.mxu0 %vm2841_vm0, %v2840_v2  ;;  %2694 = vmatpush3.bf16.msra.mxu0 %v2766_v26 }
0x1722   :  { %2695 = vmatprep.subr.bf16.mxu0 %v2840_v2 }
0x1725   :  { %2696 = vmatpush3.bf16.msra.mxu0 %v2767_v44 }
0x1726   :  { %2697 = vmatprep.subr.bf16.mxu0 %v2840_v2 }
0x1729   :  { %2698 = vmatpush3.bf16.msra.mxu0 %v2768_v57  ;;  %v2116_v57 = vrot.slane %v3254_v47, %v3021_v63  ;;  %v2772_v63 = vld [vmem:[%s3446_s12] sm:$0xff]  }
0x172a   :  { %2699 = vmatprep.subr.bf16.mxu0 %v2840_v2 }
0x172d   :  { %2700 = vmatpush3.bf16.msra.mxu0 %v2769_v58 }
0x17f3   :  { %v1870_v3 = vpop.f32.mrb[52].mxu0 }
0x17f4   :  { %v1877_v5 = vadd.f32 %v1870_v3, %v1518_v0  ;;  %v2683_v6 = vpop.f32.mrb[53].mxu0 }
0x17f5   :  { %v1873_v11 = vpop.f32.mrb[54].mxu0 }
0x17f6   :  { %v1878_v8 = vadd.f32 %v1873_v11, %v1519_v4  ;;  %v2684_v10 = vpop.f32.mrb[55].mxu0  ;;  %v1879_v12 = vadd.f32 %v1877_v5, %v3223_v35 }
0x17f8   :  { %v1881_v13 = vsel %vm144_vm4, %v1879_v12, 0.0  ;;  %v1880_v1 = vadd.f32 %v1878_v8, %v3225_v36  ;;  %v2764_v36 = vld [vmem:[%s3443_s9 + $0x10] sm:$0xff]  }
0x17f9   :  { %1882 = vadd.xlane.f32.xlu0 %v1881_v13  ;;  %2686 = vmatpush3.bf16.msra.mxu1 %v2764_v36 }
0x17fa   :  { %v1884_v14 = vsel %vm144_vm4, %v1880_v1, 0.0  ;;  %2687 = vmatprep.subr.bf16.mxu1 %v2840_v2 }
0x17fd   :  { %1885 = vadd.xlane.f32.xlu0 %v1884_v14  ;;  %2688 = vmatpush3.bf16.msra.mxu1 %v2765_v21 }
0x17fe   :  { %2705 = vmatprep.subr.bf16.mxu1 %v2840_v2 }
0x1886   :  { %v1883_v50 = vpop.xlane.xlu0 %1882 }
0x1887   :  { %v1887_v56 = vmul.f32 0.03125, %v1883_v50 }
0x1889   :  { %v1889_v60 = vsub.f32 %v1879_v12, %v1887_v56 }
0x188a   :  { %v1886_v16 = vpop.xlane.xlu0 %1885 }
0x188b   :  { %v1888_v7 = vmul.f32 0.03125, %v1886_v16  ;;  %v1891_v17 = vmul.f32 %v1889_v60, %v1889_v60 }
0x188d   :  { %v1890_v18 = vsub.f32 %v1880_v1, %v1888_v7  ;;  %v1893_v19 = vsel %vm144_vm4, %v1891_v17, 0.0 }
0x188e   :  { %1894 = vadd.xlane.f32.xlu0 %v1893_v19 }
0x188f   :  { %v1892_v20 = vmul.f32 %v1890_v18, %v1890_v18 }
0x1891   :  { %v1896_v35 = vsel %vm144_vm4, %v1892_v20, 0.0 }
0x1892   :  { %1897 = vadd.xlane.f32.xlu0 %v1896_v35 }
0x191b   :  { %v1895_v23 = vpop.xlane.xlu0 %1894 }
0x191c   :  { %v1899_v24 = vmul.f32 0.03125, %v1895_v23 }
0x191e   :  { %v1901_v25 = vadd.f32 1e-12, %v1899_v24 }
0x191f   :  { %v1898_v28 = vpop.xlane.xlu0 %1897 }
0x1920   :  { %2822 = vrsqrt.f32 %v1901_v25  ;;  %v1900_v31 = vmul.f32 0.03125, %v1898_v28 }
0x1922   :  { %v1902_v32 = vadd.f32 1e-12, %v1900_v31 }
0x1924   :  { %2824 = vrsqrt.f32 %v1902_v32 }
0x192a   :  { %v2823_v33 = vpop.eup %2822 }
0x192b   :  { %v1905_v37 = vmul.f32 %v2823_v33, %v1889_v60  ;;  %v2016_v60 = vrot.slane %v3254_v47, %v3030_v9 }
0x192d   :  { %v1911_v29 = vmul.f32 %v1910_v34, %v1905_v37 }
0x192e   :  { %v2825_v27 = vpop.eup %2824 }
0x192f   :  { %v1906_v39 = vmul.f32 %v2825_v27, %v1890_v18  ;;  %v1917_v30 = vadd.f32 %v1916_v38, %v1911_v29  ;;  %v2771_v29 = vld [vmem:[%s3445_s11 + $0x8] sm:$0xff]  }
0x1931   :  { %v1912_v40 = vmul.f32 %v1910_v34, %v1906_v39 }
0x1933   :  { %v1918_v41 = vadd.f32 %v1916_v38, %v1912_v40  ;;  %v2770_v38 = vld [vmem:[%s3445_s11] sm:$0xff]  }
0x1935   :  { %v1919_v42 = vpack.c.bf16 %v1918_v41, %v1917_v30 }
0x1937   :  { %2690 = vmatmul.mubr.msk.bf16.vlgmr.msra.gmra.mrb[52].mxu1 %vm144_vm4, %v1919_v42 }
0x1938   :  { %2709 = vmatprep.mubr.msk.bf16.mxu1 %vm2841_vm0, %v2840_v2  ;;  %2706 = vmatpush3.bf16.msra.mxu1 %v2770_v38 }
0x1939   :  { %2707 = vmatprep.subr.bf16.mxu1 %v2840_v2 }
0x193c   :  { %2708 = vmatpush3.bf16.msra.mxu1 %v2771_v29 }
0x193d   :  { %2713 = vmatprep.subr.bf16.mxu1 %v2840_v2 }
0x1a0a   :  { %v1978_v49 = vpop.f32.mrb[52].mxu1 }
0x1a0b   :  { %v1979_v51 = vadd.f32 %v1978_v49, %v1928_v48  ;;  %v2691_v52 = vpop.f32.mrb[53].mxu1  ;;  %v2122_v49 = vrot.slane %v3254_v47, %v3135_v22  ;;  %v2773_v22 = vld [vmem:[%s3446_s12 + $0x8] sm:$0xff]   ;;  %v2838_v47 = vld [vmem:[%s3440_s3] sm:$0xff] }
0x1a0c   :  { %v1981_v53 = vpop.f32.mrb[54].mxu1 }
0x1a0d   :  { %v1987_v54 = vmul.f32 0.044715, %v1979_v51  ;;  %v1982_v46 = vadd.f32 %v1981_v53, %v1928_v48  ;;  %v2692_v55 = vpop.f32.mrb[55].mxu1  ;;  %v1985_v12 = vmul.f32 0.5, %v1979_v51 }
0x1a0f   :  { %v1989_v59 = vmul.f32 %v1987_v54, %v1979_v51  ;;  %v1988_v61 = vmul.f32 0.044715, %v1982_v46  ;;  %v1986_v13 = vmul.f32 0.5, %v1982_v46 }
0x1a11   :  { %v1991_v45 = vmul.f32 %v1989_v59, %v1979_v51  ;;  %v1990_v0 = vmul.f32 %v1988_v61, %v1982_v46  ;;  %v2133_v59 = vrot.slane %v2838_v47, %v3184_v15 }
0x1a13   :  { %v1993_v3 = vadd.f32 %v1991_v45, %v1979_v51  ;;  %v1992_v4 = vmul.f32 %v1990_v0, %v1982_v46 }
0x1a15   :  { %v1995_v5 = vmul.f32 0.7978846, %v1993_v3  ;;  %v1994_v6 = vadd.f32 %v1992_v4, %v1982_v46 }
0x1a17   :  { %2826 = vtanh.f32 %v1995_v5  ;;  %v1996_v11 = vmul.f32 0.7978846, %v1994_v6 }
0x1a19   :  { %2828 = vtanh.f32 %v1996_v11 }
0x1a21   :  { %v2827_v8 = vpop.eup %2826 }
0x1a22   :  { %v1999_v62 = vadd.f32 1.0, %v2827_v8 }
0x1a23   :  { %v2829_v10 = vpop.eup %2828 }
0x1a24   :  { %v2000_v1 = vadd.f32 1.0, %v2829_v10  ;;  %v2001_v14 = vmul.f32 %v1999_v62, %v1985_v12 }
0x1a26   :  { %v2002_v50 = vmul.f32 %v2000_v1, %v1986_v13 }
0x1a28   :  { %v2003_v56 = vpack.c.bf16 %v2002_v50, %v2001_v14 }
0x1a2a   :  { %2702 = vmatmul.mubr.msk.bf16.vlgmr.msra.gmra.mrb[56].mxu0 %vm96_vm3, %v2003_v56 }
0x1afd   :  { %v2078_v16 = vpop.f32.mrb[56].mxu0 }
0x1afe   :  { %v2079_v7 = vadd.f32 %v2078_v16, %v2016_v60  ;;  %v2703_v17 = vpop.f32.mrb[57].mxu0 }
0x1aff   :  { %v2081_v18 = vpop.f32.mrb[58].mxu0 }
0x1b00   :  { %v2082_v19 = vadd.f32 %v2081_v18, %v2016_v60  ;;  %v2704_v20 = vpop.f32.mrb[59].mxu0  ;;  %v2085_v35 = vadd.f32 %v2079_v7, %v1917_v30 }
0x1b02   :  { %v2087_v36 = vsel %vm144_vm4, %v2085_v35, 0.0  ;;  %v2086_v21 = vadd.f32 %v2082_v19, %v1918_v41 }
0x1b03   :  { %2088 = vadd.xlane.f32.xlu1 %v2087_v36 }
0x1b04   :  { %v2090_v23 = vsel %vm144_vm4, %v2086_v21, 0.0 }
0x1b05   :  { %2091 = vadd.xlane.f32.xlu0 %v2090_v23 }
0x1b90   :  { %v2089_v24 = vpop.xlane.xlu1 %2088 }
0x1b91   :  { %v2093_v25 = vmul.f32 0.03125, %v2089_v24 }
0x1b92   :  { %v2092_v28 = vpop.xlane.xlu0 %2091 }
0x1b93   :  { %v2095_v31 = vsub.f32 %v2085_v35, %v2093_v25  ;;  %v2094_v32 = vmul.f32 0.03125, %v2092_v28 }
0x1b95   :  { %v2096_v9 = vsub.f32 %v2086_v21, %v2094_v32  ;;  %v2097_v33 = vmul.f32 %v2095_v31, %v2095_v31 }
0x1b97   :  { %v2099_v34 = vsel %vm144_vm4, %v2097_v33, 0.0  ;;  %v2098_v37 = vmul.f32 %v2096_v9, %v2096_v9 }
0x1b98   :  { %2100 = vadd.xlane.f32.xlu0 %v2099_v34 }
0x1b99   :  { %v2102_v27 = vsel %vm144_vm4, %v2098_v37, 0.0 }
0x1b9c   :  { %2103 = vadd.xlane.f32.xlu0 %v2102_v27 }
0x1c25   :  { %v2101_v39 = vpop.xlane.xlu0 %2100 }
0x1c26   :  { %v2105_v40 = vmul.f32 0.03125, %v2101_v39 }
0x1c28   :  { %v2107_v30 = vadd.f32 1e-12, %v2105_v40 }
0x1c29   :  { %v2104_v41 = vpop.xlane.xlu0 %2103 }
0x1c2a   :  { %2830 = vrsqrt.f32 %v2107_v30  ;;  %v2106_v42 = vmul.f32 0.03125, %v2104_v41 }
0x1c2c   :  { %v2108_v26 = vadd.f32 1e-12, %v2106_v42 }
0x1c2e   :  { %2832 = vrsqrt.f32 %v2108_v26 }
0x1c34   :  { %v2831_v44 = vpop.eup %2830 }
0x1c35   :  { %v2111_v58 = vmul.f32 %v2831_v44, %v2095_v31 }
0x1c37   :  { %v2117_v51 = vmul.f32 %v2116_v57, %v2111_v58 }
0x1c38   :  { %v2833_v48 = vpop.eup %2832 }
0x1c39   :  { %v2112_v52 = vmul.f32 %v2833_v48, %v2096_v9  ;;  %v2123_v54 = vadd.f32 %v2122_v49, %v2117_v51 }
0x1c3b   :  { %v2118_v53 = vmul.f32 %v2116_v57, %v2112_v52 }
0x1c3d   :  { %v2124_v46 = vadd.f32 %v2122_v49, %v2118_v53 }
0x1c3f   :  { %v2125_v55 = vpack.c.bf16 %v2124_v46, %v2123_v54 }
0x1c41   :  { %2710 = vmatmul.mubr.msk.bf16.vlgmr.msra.gmra.mrb[56].mxu1 %vm144_vm4, %v2125_v55 }
0x1c42   :  { %2717 = vmatprep.mubr.msk.bf16.mxu1 %vm2841_vm0, %v2840_v2  ;;  %2714 = vmatpush3.bf16.msra.mxu1 %v2772_v63 }
0x1c43   :  { %2715 = vmatprep.subr.bf16.mxu1 %v2840_v2  ;;  %v2200_v2 = vrot.slane %v2838_v47, %v3192_v43 }
0x1c46   :  { %2716 = vmatpush3.bf16.msra.mxu1 %v2773_v22 }
0x1d14   :  { %v2183_v61 = vpop.f32.mrb[56].mxu1 }
0x1d15   :  { %v2184_v45 = vadd.f32 %v2183_v61, %v2133_v59  ;;  %v2711_v0 = vpop.f32.mrb[57].mxu1 }
0x1d16   :  { %v2186_v3 = vpop.f32.mrb[58].mxu1 }
0x1d17   :  { %v2187_v4 = vadd.f32 %v2186_v3, %v2133_v59  ;;  %v2712_v5 = vpop.f32.mrb[59].mxu1  ;;  %2834 = vtanh.f32 %v2184_v45 }
0x1d19   :  { %2836 = vtanh.f32 %v2187_v4 }
0x1d21   :  { %v2835_v6 = vpop.eup %2834 }
0x1d23   :  { %v2837_v11 = vpop.eup %2836 }
0x1d24   :  { %v2192_v8 = vpack.c.bf16 %v2837_v11, %v2835_v6 }
0x1d26   :  { %2718 = vmatmul.mubr.msk.bf16.vlgmr.msra.gmra.mrb[60].mxu1 %vm144_vm4, %v2192_v8 }
0x1df9   :  { %v2250_v62 = vpop.f32.mrb[60].mxu1 }
0x1dfa   :  { %v2251_v10 = vadd.f32 %v2250_v62, %v2200_v2  ;;  %v2719_v12 = vpop.f32.mrb[61].mxu1 }
0x1dfb   :  { %v2253_v13 = vpop.f32.mrb[62].mxu1 }
0x1dfc   :  { %2257 = vst [vmem:[%s3447_s13] sm:$0xff] %v2251_v10  ;;  %v2254_v15 = vadd.f32 %v2253_v13, %v2200_v2  ;;  %v2720_v1 = vpop.f32.mrb[63].mxu1 }
0x1dfe   :  { %2258 = vst [vmem:[%s3447_s13 + $0x8] sm:$0xff] %v2254_v15 }

</bundles_post_ra>
